<compile_context>
chip_gen: v6e
topology: v6e:2x2x1
jax: 0.10.0
libtpu: 0.0.40
codegen_flags: <defaults>
</compile_context>

<pallas_src>
import functools

import jax
import jax.numpy as jnp
from jax import lax
from jax.experimental import pallas as pl
from jax.experimental.pallas import tpu as pltpu

# ----------------------- config (configs.* of the module) ----------------------
ENC_IN = 4        # configs.enc_in
D_MODEL = 32      # configs.d_model
E_LAYERS = 2      # configs.e_layers
SEQ_LEN = 8       # configs.seq_len
PRED_LEN = 4      # configs.pred_len
DROPOUT = 0.1     # configs.dropout (identity at inference)
BATCH = 2
LN_EPS = 1e-5


def model_kernel(x_ref, ln_w_ref, ln_b_ref,
                 wih0_ref, whh0_ref, b0_ref,
                 wih1_ref, whh1_ref, b1_ref,
                 wfc_ref, bfc_ref,
                 out_ref,
                 *, T, N, H):
    B = x_ref.shape[0]
    tn = T * N

    # ---- LayerNorm(normalized_shape=[seq_len, enc_in]) ----
    # x is presented flattened as (B, T*N), so the joint (T, N) normalization
    # is a plain row-wise reduction (biased variance, like PyTorch LN).
    x = x_ref[...]                                            # (B, T*N)
    mean = jnp.sum(x, axis=1, keepdims=True) * (1.0 / tn)
    d = x - mean
    var = jnp.sum(d * d, axis=1, keepdims=True) * (1.0 / tn)
    xn = d * lax.rsqrt(var + LN_EPS) * ln_w_ref[...] + ln_b_ref[...]   # (B, T*N)

    # ---- hoist weight loads: resident across the whole unrolled recurrence ----
    wih0 = wih0_ref[...]          # (N, 4H)
    whh0 = whh0_ref[...]          # (H, 4H)
    b0 = b0_ref[...]              # (1, 4H)
    wih1 = wih1_ref[...]          # (H, 4H)
    whh1 = whh1_ref[...]          # (H, 4H)
    b1 = b1_ref[...]              # (1, 4H)

    # ---- hoist layer-0 input projections off the serial recurrent chain ----
    # T independent (B, N) x (N, 4H) matmuls, all issueable before the loop.
    gx0 = [jnp.dot(xn[:, t * N:(t + 1) * N], wih0,
                   preferred_element_type=jnp.float32) + b0
           for t in range(T)]

    def gate(gates, c):
        # PyTorch gate order: i, f, g, o.
        i = jax.nn.sigmoid(gates[:, 0 * H:1 * H])
        f = jax.nn.sigmoid(gates[:, 1 * H:2 * H])
        g = jnp.tanh(gates[:, 2 * H:3 * H])
        o = jax.nn.sigmoid(gates[:, 3 * H:4 * H])
        c_new = f * c + i * g
        return o * jnp.tanh(c_new), c_new

    def layer1_step(h0_in, h1, c1):
        g1 = (jnp.dot(h0_in, wih1, preferred_element_type=jnp.float32)
              + jnp.dot(h1, whh1, preferred_element_type=jnp.float32)
              + b1)
        return gate(g1, c1)

    z = jnp.zeros((B, H), jnp.float32)
    h0, c0, h1, c1 = z, z, z, z

    # ---- software-pipelined recurrences (fully unrolled, T is small) ----
    # Iteration t: layer-0 step t (depends on h0[t-1]) and layer-1 step t-1
    # (depends on h0[t-1], h1[t-2]) -> two independent chains per iteration.
    for t in range(T):
        h0_prev = h0
        g0 = jnp.dot(h0, whh0, preferred_element_type=jnp.float32) + gx0[t]
        h0, c0 = gate(g0, c0)
        if t >= 1:
            h1, c1 = layer1_step(h0_prev, h1, c1)
    # drain: layer-1 step T-1
    h1, c1 = layer1_step(h0, h1, c1)

    # Dropout: identity at inference time (eval mode).
    # ---- fc on the last timestep's hidden state; single (B, P) store ----
    out_ref[...] = (jnp.dot(h1, wfc_ref[...], preferred_element_type=jnp.float32)
                    + bfc_ref[...])


def model_forward(x_enc, params, *, pred_len):
    B, T, N = x_enc.shape
    H = params["whh0_t"].shape[0]
    P = pred_len * N

    vmem = pl.BlockSpec(memory_space=pltpu.MemorySpace.VMEM)
    out = pl.pallas_call(
        functools.partial(model_kernel, T=T, N=N, H=H),
        out_shape=jax.ShapeDtypeStruct((B, P), jnp.float32),
        in_specs=[vmem] * 11,
        out_specs=vmem,
    )(x_enc.reshape(B, T * N),
      params["ln_w"].reshape(1, T * N), params["ln_b"].reshape(1, T * N),
      params["wih0_t"], params["whh0_t"], params["b0"],
      params["wih1_t"], params["whh1_t"], params["b1"],
      params["wfc_t"], params["bfc"])
    return out.reshape(B, pred_len, N)


# ----------------------------- pure-JAX reference ------------------------------
def model_ref(x_enc, params, *, pred_len):
    B, T, N = x_enc.shape
    H = params["whh0_t"].shape[0]
    mean = jnp.mean(x_enc, axis=(1, 2), keepdims=True)
    var = jnp.mean((x_enc - mean) ** 2, axis=(1, 2), keepdims=True)
    xn = (x_enc - mean) / jnp.sqrt(var + LN_EPS) * params["ln_w"] + params["ln_b"]

    def run_layer(seq, wih_t, whh_t, b):
        def cell(carry, x_t):
            h, c = carry
            gates = x_t @ wih_t + h @ whh_t + b[0]
            i = jax.nn.sigmoid(gates[:, 0 * H:1 * H])
            f = jax.nn.sigmoid(gates[:, 1 * H:2 * H])
            g = jnp.tanh(gates[:, 2 * H:3 * H])
            o = jax.nn.sigmoid(gates[:, 3 * H:4 * H])
            c = f * c + i * g
            h = o * jnp.tanh(c)
            return (h, c), h
        h0 = jnp.zeros((B, H), jnp.float32)
        (_, _), hs = lax.scan(cell, (h0, h0), jnp.swapaxes(seq, 0, 1))
        return jnp.swapaxes(hs, 0, 1)

    h_seq = run_layer(xn, params["wih0_t"], params["whh0_t"], params["b0"])
    h_seq = run_layer(h_seq, params["wih1_t"], params["whh1_t"], params["b1"])
    pred = h_seq[:, -1, :] @ params["wfc_t"] + params["bfc"][0]
    return pred.reshape(B, pred_len, N)


def init_params(key):
    H, N, T, P = D_MODEL, ENC_IN, SEQ_LEN, PRED_LEN * ENC_IN
    ks = jax.random.split(key, 12)
    s = 1.0 / jnp.sqrt(H)
    u = lambda k, shape: jax.random.uniform(k, shape, jnp.float32, -s, s)
    return {
        "ln_w": jnp.ones((T, N), jnp.float32),
        "ln_b": jnp.zeros((T, N), jnp.float32),
        # LSTM layer 0 (input_size = enc_in); weights stored pre-transposed.
        "wih0_t": u(ks[0], (N, 4 * H)),
        "whh0_t": u(ks[1], (H, 4 * H)),
        "b0": u(ks[2], (1, 4 * H)) + u(ks[3], (1, 4 * H)),   # b_ih + b_hh
        # LSTM layer 1 (input_size = d_model)
        "wih1_t": u(ks[4], (H, 4 * H)),
        "whh1_t": u(ks[5], (H, 4 * H)),
        "b1": u(ks[6], (1, 4 * H)) + u(ks[7], (1, 4 * H)),
        # fc: Linear(d_model -> pred_len * enc_in)
        "wfc_t": u(ks[8], (H, P)),
        "bfc": u(ks[9], (1, P)),
    }


if __name__ == "__main__":
    key = jax.random.PRNGKey(0)
    pkey, xkey = jax.random.split(key)
    params = init_params(pkey)
    x_enc = jax.random.normal(xkey, (BATCH, SEQ_LEN, ENC_IN), jnp.float32)
    # x_mark_enc / x_dec / x_mark_dec are unused by the module's forward.

    out = model_forward(x_enc, params, pred_len=PRED_LEN)
    out = jax.block_until_ready(out)
    assert out.shape == (BATCH, PRED_LEN, ENC_IN)

    ref = jax.block_until_ready(model_ref(x_enc, params, pred_len=PRED_LEN))
    assert jnp.allclose(out, ref, atol=1e-4, rtol=1e-4), (out, ref)
    print("KERNEL_OK")
</pallas_src>

<mosaic_0001>
module attributes {stable_mosaic.version = 11 : i64} {
  func.func @model_kernel(%arg0: memref<2x32xf32, #tpu.memory_space<vmem>>, %arg1: memref<1x32xf32, #tpu.memory_space<vmem>>, %arg2: memref<1x32xf32, #tpu.memory_space<vmem>>, %arg3: memref<4x128xf32, #tpu.memory_space<vmem>>, %arg4: memref<32x128xf32, #tpu.memory_space<vmem>>, %arg5: memref<1x128xf32, #tpu.memory_space<vmem>>, %arg6: memref<32x128xf32, #tpu.memory_space<vmem>>, %arg7: memref<32x128xf32, #tpu.memory_space<vmem>>, %arg8: memref<1x128xf32, #tpu.memory_space<vmem>>, %arg9: memref<32x16xf32, #tpu.memory_space<vmem>>, %arg10: memref<1x16xf32, #tpu.memory_space<vmem>>, %arg11: memref<2x16xf32, #tpu.memory_space<vmem>>) attributes {dimension_semantics = [], scalar_prefetch = 0 : i64, scratch_operands = 0 : i64, tpu.core_type = #tpu.core_type<tc>} {
    %c0 = arith.constant 0 : index
    %c0_0 = arith.constant 0 : index
    %0 = vector.load %arg0[%c0, %c0_0] : memref<2x32xf32, #tpu.memory_space<vmem>>, vector<2x32xf32>
    %cst = arith.constant dense<0.000000e+00> : vector<2xf32>
    %1 = vector.multi_reduction <add>, %0, %cst [1] : vector<2x32xf32> to vector<2xf32>
    %2 = vector.shape_cast %1 : vector<2xf32> to vector<2x1xf32>
    %cst_1 = arith.constant 3.125000e-02 : f32
    %3 = vector.broadcast %cst_1 : f32 to vector<2x1xf32>
    %4 = arith.mulf %2, %3 : vector<2x1xf32>
    %5 = vector.broadcast %4 : vector<2x1xf32> to vector<2x32xf32>
    %6 = arith.subf %0, %5 : vector<2x32xf32>
    %7 = arith.mulf %6, %6 : vector<2x32xf32>
    %cst_2 = arith.constant dense<0.000000e+00> : vector<2xf32>
    %8 = vector.multi_reduction <add>, %7, %cst_2 [1] : vector<2x32xf32> to vector<2xf32>
    %9 = vector.shape_cast %8 : vector<2xf32> to vector<2x1xf32>
    %cst_3 = arith.constant 3.125000e-02 : f32
    %10 = vector.broadcast %cst_3 : f32 to vector<2x1xf32>
    %11 = arith.mulf %9, %10 : vector<2x1xf32>
    %cst_4 = arith.constant 9.99999974E-6 : f32
    %12 = vector.broadcast %cst_4 : f32 to vector<2x1xf32>
    %13 = arith.addf %11, %12 : vector<2x1xf32>
    %14 = math.rsqrt %13 : vector<2x1xf32>
    %15 = vector.broadcast %14 : vector<2x1xf32> to vector<2x32xf32>
    %16 = arith.mulf %6, %15 : vector<2x32xf32>
    %c0_5 = arith.constant 0 : index
    %c0_6 = arith.constant 0 : index
    %17 = vector.load %arg1[%c0_5, %c0_6] : memref<1x32xf32, #tpu.memory_space<vmem>>, vector<1x32xf32>
    %18 = vector.broadcast %17 : vector<1x32xf32> to vector<2x32xf32>
    %19 = arith.mulf %16, %18 : vector<2x32xf32>
    %c0_7 = arith.constant 0 : index
    %c0_8 = arith.constant 0 : index
    %20 = vector.load %arg2[%c0_7, %c0_8] : memref<1x32xf32, #tpu.memory_space<vmem>>, vector<1x32xf32>
    %21 = vector.broadcast %20 : vector<1x32xf32> to vector<2x32xf32>
    %22 = arith.addf %19, %21 : vector<2x32xf32>
    %c0_9 = arith.constant 0 : index
    %c0_10 = arith.constant 0 : index
    %23 = vector.load %arg3[%c0_9, %c0_10] : memref<4x128xf32, #tpu.memory_space<vmem>>, vector<4x128xf32>
    %c0_11 = arith.constant 0 : index
    %c0_12 = arith.constant 0 : index
    %24 = vector.load %arg4[%c0_11, %c0_12] : memref<32x128xf32, #tpu.memory_space<vmem>>, vector<32x128xf32>
    %c0_13 = arith.constant 0 : index
    %c0_14 = arith.constant 0 : index
    %25 = vector.load %arg5[%c0_13, %c0_14] : memref<1x128xf32, #tpu.memory_space<vmem>>, vector<1x128xf32>
    %c0_15 = arith.constant 0 : index
    %c0_16 = arith.constant 0 : index
    %26 = vector.load %arg6[%c0_15, %c0_16] : memref<32x128xf32, #tpu.memory_space<vmem>>, vector<32x128xf32>
    %c0_17 = arith.constant 0 : index
    %c0_18 = arith.constant 0 : index
    %27 = vector.load %arg7[%c0_17, %c0_18] : memref<32x128xf32, #tpu.memory_space<vmem>>, vector<32x128xf32>
    %c0_19 = arith.constant 0 : index
    %c0_20 = arith.constant 0 : index
    %28 = vector.load %arg8[%c0_19, %c0_20] : memref<1x128xf32, #tpu.memory_space<vmem>>, vector<1x128xf32>
    %29 = vector.extract_strided_slice %22 {offsets = [0, 0], sizes = [2, 4], strides = [1, 1]} : vector<2x32xf32> to vector<2x4xf32>
    %cst_21 = arith.constant dense<0.000000e+00> : vector<2x128xf32>
    %30 = tpu.matmul %29, %23, %cst_21 {dimension_numbers = #tpu.dot_dimension_numbers<[1], [0], [0], [1], [0, 0, 1, 1], [], []>} : vector<2x4xf32>, vector<4x128xf32>, vector<2x128xf32> -> vector<2x128xf32>
    %31 = vector.broadcast %25 : vector<1x128xf32> to vector<2x128xf32>
    %32 = arith.addf %30, %31 : vector<2x128xf32>
    %33 = vector.extract_strided_slice %22 {offsets = [0, 4], sizes = [2, 4], strides = [1, 1]} : vector<2x32xf32> to vector<2x4xf32>
    %cst_22 = arith.constant dense<0.000000e+00> : vector<2x128xf32>
    %34 = tpu.matmul %33, %23, %cst_22 {dimension_numbers = #tpu.dot_dimension_numbers<[1], [0], [0], [1], [0, 0, 1, 1], [], []>} : vector<2x4xf32>, vector<4x128xf32>, vector<2x128xf32> -> vector<2x128xf32>
    %35 = vector.broadcast %25 : vector<1x128xf32> to vector<2x128xf32>
    %36 = arith.addf %34, %35 : vector<2x128xf32>
    %37 = vector.extract_strided_slice %22 {offsets = [0, 8], sizes = [2, 4], strides = [1, 1]} : vector<2x32xf32> to vector<2x4xf32>
    %cst_23 = arith.constant dense<0.000000e+00> : vector<2x128xf32>
    %38 = tpu.matmul %37, %23, %cst_23 {dimension_numbers = #tpu.dot_dimension_numbers<[1], [0], [0], [1], [0, 0, 1, 1], [], []>} : vector<2x4xf32>, vector<4x128xf32>, vector<2x128xf32> -> vector<2x128xf32>
    %39 = vector.broadcast %25 : vector<1x128xf32> to vector<2x128xf32>
    %40 = arith.addf %38, %39 : vector<2x128xf32>
    %41 = vector.extract_strided_slice %22 {offsets = [0, 12], sizes = [2, 4], strides = [1, 1]} : vector<2x32xf32> to vector<2x4xf32>
    %cst_24 = arith.constant dense<0.000000e+00> : vector<2x128xf32>
    %42 = tpu.matmul %41, %23, %cst_24 {dimension_numbers = #tpu.dot_dimension_numbers<[1], [0], [0], [1], [0, 0, 1, 1], [], []>} : vector<2x4xf32>, vector<4x128xf32>, vector<2x128xf32> -> vector<2x128xf32>
    %43 = vector.broadcast %25 : vector<1x128xf32> to vector<2x128xf32>
    %44 = arith.addf %42, %43 : vector<2x128xf32>
    %45 = vector.extract_strided_slice %22 {offsets = [0, 16], sizes = [2, 4], strides = [1, 1]} : vector<2x32xf32> to vector<2x4xf32>
    %cst_25 = arith.constant dense<0.000000e+00> : vector<2x128xf32>
    %46 = tpu.matmul %45, %23, %cst_25 {dimension_numbers = #tpu.dot_dimension_numbers<[1], [0], [0], [1], [0, 0, 1, 1], [], []>} : vector<2x4xf32>, vector<4x128xf32>, vector<2x128xf32> -> vector<2x128xf32>
    %47 = vector.broadcast %25 : vector<1x128xf32> to vector<2x128xf32>
    %48 = arith.addf %46, %47 : vector<2x128xf32>
    %49 = vector.extract_strided_slice %22 {offsets = [0, 20], sizes = [2, 4], strides = [1, 1]} : vector<2x32xf32> to vector<2x4xf32>
    %cst_26 = arith.constant dense<0.000000e+00> : vector<2x128xf32>
    %50 = tpu.matmul %49, %23, %cst_26 {dimension_numbers = #tpu.dot_dimension_numbers<[1], [0], [0], [1], [0, 0, 1, 1], [], []>} : vector<2x4xf32>, vector<4x128xf32>, vector<2x128xf32> -> vector<2x128xf32>
    %51 = vector.broadcast %25 : vector<1x128xf32> to vector<2x128xf32>
    %52 = arith.addf %50, %51 : vector<2x128xf32>
    %53 = vector.extract_strided_slice %22 {offsets = [0, 24], sizes = [2, 4], strides = [1, 1]} : vector<2x32xf32> to vector<2x4xf32>
    %cst_27 = arith.constant dense<0.000000e+00> : vector<2x128xf32>
    %54 = tpu.matmul %53, %23, %cst_27 {dimension_numbers = #tpu.dot_dimension_numbers<[1], [0], [0], [1], [0, 0, 1, 1], [], []>} : vector<2x4xf32>, vector<4x128xf32>, vector<2x128xf32> -> vector<2x128xf32>
    %55 = vector.broadcast %25 : vector<1x128xf32> to vector<2x128xf32>
    %56 = arith.addf %54, %55 : vector<2x128xf32>
    %57 = vector.extract_strided_slice %22 {offsets = [0, 28], sizes = [2, 4], strides = [1, 1]} : vector<2x32xf32> to vector<2x4xf32>
    %cst_28 = arith.constant dense<0.000000e+00> : vector<2x128xf32>
    %58 = tpu.matmul %57, %23, %cst_28 {dimension_numbers = #tpu.dot_dimension_numbers<[1], [0], [0], [1], [0, 0, 1, 1], [], []>} : vector<2x4xf32>, vector<4x128xf32>, vector<2x128xf32> -> vector<2x128xf32>
    %59 = vector.broadcast %25 : vector<1x128xf32> to vector<2x128xf32>
    %60 = arith.addf %58, %59 : vector<2x128xf32>
    %cst_29 = arith.constant 0.000000e+00 : f32
    %61 = vector.broadcast %cst_29 : f32 to vector<2x32xf32>
    %cst_30 = arith.constant dense<0.000000e+00> : vector<2x128xf32>
    %62 = tpu.matmul %61, %24, %cst_30 {dimension_numbers = #tpu.dot_dimension_numbers<[1], [0], [0], [1], [0, 0, 1, 1], [], []>} : vector<2x32xf32>, vector<32x128xf32>, vector<2x128xf32> -> vector<2x128xf32>
    %63 = arith.addf %62, %32 : vector<2x128xf32>
    %64 = vector.extract_strided_slice %63 {offsets = [0, 0], sizes = [2, 32], strides = [1, 1]} : vector<2x128xf32> to vector<2x32xf32>
    %65 = arith.negf %64 : vector<2x32xf32>
    %66 = math.exp %65 : vector<2x32xf32>
    %cst_31 = arith.constant 1.000000e+00 : f32
    %67 = vector.broadcast %cst_31 : f32 to vector<2x32xf32>
    %68 = arith.addf %67, %66 : vector<2x32xf32>
    %69 = arith.divf %67, %68 : vector<2x32xf32>
    %70 = vector.extract_strided_slice %63 {offsets = [0, 32], sizes = [2, 32], strides = [1, 1]} : vector<2x128xf32> to vector<2x32xf32>
    %71 = arith.negf %70 : vector<2x32xf32>
    %72 = math.exp %71 : vector<2x32xf32>
    %cst_32 = arith.constant 1.000000e+00 : f32
    %73 = vector.broadcast %cst_32 : f32 to vector<2x32xf32>
    %74 = arith.addf %73, %72 : vector<2x32xf32>
    %75 = arith.divf %73, %74 : vector<2x32xf32>
    %76 = vector.extract_strided_slice %63 {offsets = [0, 64], sizes = [2, 32], strides = [1, 1]} : vector<2x128xf32> to vector<2x32xf32>
    %77 = math.tanh %76 : vector<2x32xf32>
    %78 = vector.extract_strided_slice %63 {offsets = [0, 96], sizes = [2, 32], strides = [1, 1]} : vector<2x128xf32> to vector<2x32xf32>
    %79 = arith.negf %78 : vector<2x32xf32>
    %80 = math.exp %79 : vector<2x32xf32>
    %cst_33 = arith.constant 1.000000e+00 : f32
    %81 = vector.broadcast %cst_33 : f32 to vector<2x32xf32>
    %82 = arith.addf %81, %80 : vector<2x32xf32>
    %83 = arith.divf %81, %82 : vector<2x32xf32>
    %84 = arith.mulf %75, %61 : vector<2x32xf32>
    %85 = arith.mulf %69, %77 : vector<2x32xf32>
    %86 = arith.addf %84, %85 : vector<2x32xf32>
    %87 = math.tanh %86 : vector<2x32xf32>
    %88 = arith.mulf %83, %87 : vector<2x32xf32>
    %cst_34 = arith.constant dense<0.000000e+00> : vector<2x128xf32>
    %89 = tpu.matmul %88, %24, %cst_34 {dimension_numbers = #tpu.dot_dimension_numbers<[1], [0], [0], [1], [0, 0, 1, 1], [], []>} : vector<2x32xf32>, vector<32x128xf32>, vector<2x128xf32> -> vector<2x128xf32>
    %90 = arith.addf %89, %36 : vector<2x128xf32>
    %91 = vector.extract_strided_slice %90 {offsets = [0, 0], sizes = [2, 32], strides = [1, 1]} : vector<2x128xf32> to vector<2x32xf32>
    %92 = arith.negf %91 : vector<2x32xf32>
    %93 = math.exp %92 : vector<2x32xf32>
    %cst_35 = arith.constant 1.000000e+00 : f32
    %94 = vector.broadcast %cst_35 : f32 to vector<2x32xf32>
    %95 = arith.addf %94, %93 : vector<2x32xf32>
    %96 = arith.divf %94, %95 : vector<2x32xf32>
    %97 = vector.extract_strided_slice %90 {offsets = [0, 32], sizes = [2, 32], strides = [1, 1]} : vector<2x128xf32> to vector<2x32xf32>
    %98 = arith.negf %97 : vector<2x32xf32>
    %99 = math.exp %98 : vector<2x32xf32>
    %cst_36 = arith.constant 1.000000e+00 : f32
    %100 = vector.broadcast %cst_36 : f32 to vector<2x32xf32>
    %101 = arith.addf %100, %99 : vector<2x32xf32>
    %102 = arith.divf %100, %101 : vector<2x32xf32>
    %103 = vector.extract_strided_slice %90 {offsets = [0, 64], sizes = [2, 32], strides = [1, 1]} : vector<2x128xf32> to vector<2x32xf32>
    %104 = math.tanh %103 : vector<2x32xf32>
    %105 = vector.extract_strided_slice %90 {offsets = [0, 96], sizes = [2, 32], strides = [1, 1]} : vector<2x128xf32> to vector<2x32xf32>
    %106 = arith.negf %105 : vector<2x32xf32>
    %107 = math.exp %106 : vector<2x32xf32>
    %cst_37 = arith.constant 1.000000e+00 : f32
    %108 = vector.broadcast %cst_37 : f32 to vector<2x32xf32>
    %109 = arith.addf %108, %107 : vector<2x32xf32>
    %110 = arith.divf %108, %109 : vector<2x32xf32>
    %111 = arith.mulf %102, %86 : vector<2x32xf32>
    %112 = arith.mulf %96, %104 : vector<2x32xf32>
    %113 = arith.addf %111, %112 : vector<2x32xf32>
    %114 = math.tanh %113 : vector<2x32xf32>
    %115 = arith.mulf %110, %114 : vector<2x32xf32>
    %cst_38 = arith.constant dense<0.000000e+00> : vector<2x128xf32>
    %116 = tpu.matmul %88, %26, %cst_38 {dimension_numbers = #tpu.dot_dimension_numbers<[1], [0], [0], [1], [0, 0, 1, 1], [], []>} : vector<2x32xf32>, vector<32x128xf32>, vector<2x128xf32> -> vector<2x128xf32>
    %cst_39 = arith.constant dense<0.000000e+00> : vector<2x128xf32>
    %117 = tpu.matmul %61, %27, %cst_39 {dimension_numbers = #tpu.dot_dimension_numbers<[1], [0], [0], [1], [0, 0, 1, 1], [], []>} : vector<2x32xf32>, vector<32x128xf32>, vector<2x128xf32> -> vector<2x128xf32>
    %118 = arith.addf %116, %117 : vector<2x128xf32>
    %119 = vector.broadcast %28 : vector<1x128xf32> to vector<2x128xf32>
    %120 = arith.addf %118, %119 : vector<2x128xf32>
    %121 = vector.extract_strided_slice %120 {offsets = [0, 0], sizes = [2, 32], strides = [1, 1]} : vector<2x128xf32> to vector<2x32xf32>
    %122 = arith.negf %121 : vector<2x32xf32>
    %123 = math.exp %122 : vector<2x32xf32>
    %cst_40 = arith.constant 1.000000e+00 : f32
    %124 = vector.broadcast %cst_40 : f32 to vector<2x32xf32>
    %125 = arith.addf %124, %123 : vector<2x32xf32>
    %126 = arith.divf %124, %125 : vector<2x32xf32>
    %127 = vector.extract_strided_slice %120 {offsets = [0, 32], sizes = [2, 32], strides = [1, 1]} : vector<2x128xf32> to vector<2x32xf32>
    %128 = arith.negf %127 : vector<2x32xf32>
    %129 = math.exp %128 : vector<2x32xf32>
    %cst_41 = arith.constant 1.000000e+00 : f32
    %130 = vector.broadcast %cst_41 : f32 to vector<2x32xf32>
    %131 = arith.addf %130, %129 : vector<2x32xf32>
    %132 = arith.divf %130, %131 : vector<2x32xf32>
    %133 = vector.extract_strided_slice %120 {offsets = [0, 64], sizes = [2, 32], strides = [1, 1]} : vector<2x128xf32> to vector<2x32xf32>
    %134 = math.tanh %133 : vector<2x32xf32>
    %135 = vector.extract_strided_slice %120 {offsets = [0, 96], sizes = [2, 32], strides = [1, 1]} : vector<2x128xf32> to vector<2x32xf32>
    %136 = arith.negf %135 : vector<2x32xf32>
    %137 = math.exp %136 : vector<2x32xf32>
    %cst_42 = arith.constant 1.000000e+00 : f32
    %138 = vector.broadcast %cst_42 : f32 to vector<2x32xf32>
    %139 = arith.addf %138, %137 : vector<2x32xf32>
    %140 = arith.divf %138, %139 : vector<2x32xf32>
    %141 = arith.mulf %132, %61 : vector<2x32xf32>
    %142 = arith.mulf %126, %134 : vector<2x32xf32>
    %143 = arith.addf %141, %142 : vector<2x32xf32>
    %144 = math.tanh %143 : vector<2x32xf32>
    %145 = arith.mulf %140, %144 : vector<2x32xf32>
    %cst_43 = arith.constant dense<0.000000e+00> : vector<2x128xf32>
    %146 = tpu.matmul %115, %24, %cst_43 {dimension_numbers = #tpu.dot_dimension_numbers<[1], [0], [0], [1], [0, 0, 1, 1], [], []>} : vector<2x32xf32>, vector<32x128xf32>, vector<2x128xf32> -> vector<2x128xf32>
    %147 = arith.addf %146, %40 : vector<2x128xf32>
    %148 = vector.extract_strided_slice %147 {offsets = [0, 0], sizes = [2, 32], strides = [1, 1]} : vector<2x128xf32> to vector<2x32xf32>
    %149 = arith.negf %148 : vector<2x32xf32>
    %150 = math.exp %149 : vector<2x32xf32>
    %cst_44 = arith.constant 1.000000e+00 : f32
    %151 = vector.broadcast %cst_44 : f32 to vector<2x32xf32>
    %152 = arith.addf %151, %150 : vector<2x32xf32>
    %153 = arith.divf %151, %152 : vector<2x32xf32>
    %154 = vector.extract_strided_slice %147 {offsets = [0, 32], sizes = [2, 32], strides = [1, 1]} : vector<2x128xf32> to vector<2x32xf32>
    %155 = arith.negf %154 : vector<2x32xf32>
    %156 = math.exp %155 : vector<2x32xf32>
    %cst_45 = arith.constant 1.000000e+00 : f32
    %157 = vector.broadcast %cst_45 : f32 to vector<2x32xf32>
    %158 = arith.addf %157, %156 : vector<2x32xf32>
    %159 = arith.divf %157, %158 : vector<2x32xf32>
    %160 = vector.extract_strided_slice %147 {offsets = [0, 64], sizes = [2, 32], strides = [1, 1]} : vector<2x128xf32> to vector<2x32xf32>
    %161 = math.tanh %160 : vector<2x32xf32>
    %162 = vector.extract_strided_slice %147 {offsets = [0, 96], sizes = [2, 32], strides = [1, 1]} : vector<2x128xf32> to vector<2x32xf32>
    %163 = arith.negf %162 : vector<2x32xf32>
    %164 = math.exp %163 : vector<2x32xf32>
    %cst_46 = arith.constant 1.000000e+00 : f32
    %165 = vector.broadcast %cst_46 : f32 to vector<2x32xf32>
    %166 = arith.addf %165, %164 : vector<2x32xf32>
    %167 = arith.divf %165, %166 : vector<2x32xf32>
    %168 = arith.mulf %159, %113 : vector<2x32xf32>
    %169 = arith.mulf %153, %161 : vector<2x32xf32>
    %170 = arith.addf %168, %169 : vector<2x32xf32>
    %171 = math.tanh %170 : vector<2x32xf32>
    %172 = arith.mulf %167, %171 : vector<2x32xf32>
    %cst_47 = arith.constant dense<0.000000e+00> : vector<2x128xf32>
    %173 = tpu.matmul %115, %26, %cst_47 {dimension_numbers = #tpu.dot_dimension_numbers<[1], [0], [0], [1], [0, 0, 1, 1], [], []>} : vector<2x32xf32>, vector<32x128xf32>, vector<2x128xf32> -> vector<2x128xf32>
    %cst_48 = arith.constant dense<0.000000e+00> : vector<2x128xf32>
    %174 = tpu.matmul %145, %27, %cst_48 {dimension_numbers = #tpu.dot_dimension_numbers<[1], [0], [0], [1], [0, 0, 1, 1], [], []>} : vector<2x32xf32>, vector<32x128xf32>, vector<2x128xf32> -> vector<2x128xf32>
    %175 = arith.addf %173, %174 : vector<2x128xf32>
    %176 = vector.broadcast %28 : vector<1x128xf32> to vector<2x128xf32>
    %177 = arith.addf %175, %176 : vector<2x128xf32>
    %178 = vector.extract_strided_slice %177 {offsets = [0, 0], sizes = [2, 32], strides = [1, 1]} : vector<2x128xf32> to vector<2x32xf32>
    %179 = arith.negf %178 : vector<2x32xf32>
    %180 = math.exp %179 : vector<2x32xf32>
    %cst_49 = arith.constant 1.000000e+00 : f32
    %181 = vector.broadcast %cst_49 : f32 to vector<2x32xf32>
    %182 = arith.addf %181, %180 : vector<2x32xf32>
    %183 = arith.divf %181, %182 : vector<2x32xf32>
    %184 = vector.extract_strided_slice %177 {offsets = [0, 32], sizes = [2, 32], strides = [1, 1]} : vector<2x128xf32> to vector<2x32xf32>
    %185 = arith.negf %184 : vector<2x32xf32>
    %186 = math.exp %185 : vector<2x32xf32>
    %cst_50 = arith.constant 1.000000e+00 : f32
    %187 = vector.broadcast %cst_50 : f32 to vector<2x32xf32>
    %188 = arith.addf %187, %186 : vector<2x32xf32>
    %189 = arith.divf %187, %188 : vector<2x32xf32>
    %190 = vector.extract_strided_slice %177 {offsets = [0, 64], sizes = [2, 32], strides = [1, 1]} : vector<2x128xf32> to vector<2x32xf32>
    %191 = math.tanh %190 : vector<2x32xf32>
    %192 = vector.extract_strided_slice %177 {offsets = [0, 96], sizes = [2, 32], strides = [1, 1]} : vector<2x128xf32> to vector<2x32xf32>
    %193 = arith.negf %192 : vector<2x32xf32>
    %194 = math.exp %193 : vector<2x32xf32>
    %cst_51 = arith.constant 1.000000e+00 : f32
    %195 = vector.broadcast %cst_51 : f32 to vector<2x32xf32>
    %196 = arith.addf %195, %194 : vector<2x32xf32>
    %197 = arith.divf %195, %196 : vector<2x32xf32>
    %198 = arith.mulf %189, %143 : vector<2x32xf32>
    %199 = arith.mulf %183, %191 : vector<2x32xf32>
    %200 = arith.addf %198, %199 : vector<2x32xf32>
    %201 = math.tanh %200 : vector<2x32xf32>
    %202 = arith.mulf %197, %201 : vector<2x32xf32>
    %cst_52 = arith.constant dense<0.000000e+00> : vector<2x128xf32>
    %203 = tpu.matmul %172, %24, %cst_52 {dimension_numbers = #tpu.dot_dimension_numbers<[1], [0], [0], [1], [0, 0, 1, 1], [], []>} : vector<2x32xf32>, vector<32x128xf32>, vector<2x128xf32> -> vector<2x128xf32>
    %204 = arith.addf %203, %44 : vector<2x128xf32>
    %205 = vector.extract_strided_slice %204 {offsets = [0, 0], sizes = [2, 32], strides = [1, 1]} : vector<2x128xf32> to vector<2x32xf32>
    %206 = arith.negf %205 : vector<2x32xf32>
    %207 = math.exp %206 : vector<2x32xf32>
    %cst_53 = arith.constant 1.000000e+00 : f32
    %208 = vector.broadcast %cst_53 : f32 to vector<2x32xf32>
    %209 = arith.addf %208, %207 : vector<2x32xf32>
    %210 = arith.divf %208, %209 : vector<2x32xf32>
    %211 = vector.extract_strided_slice %204 {offsets = [0, 32], sizes = [2, 32], strides = [1, 1]} : vector<2x128xf32> to vector<2x32xf32>
    %212 = arith.negf %211 : vector<2x32xf32>
    %213 = math.exp %212 : vector<2x32xf32>
    %cst_54 = arith.constant 1.000000e+00 : f32
    %214 = vector.broadcast %cst_54 : f32 to vector<2x32xf32>
    %215 = arith.addf %214, %213 : vector<2x32xf32>
    %216 = arith.divf %214, %215 : vector<2x32xf32>
    %217 = vector.extract_strided_slice %204 {offsets = [0, 64], sizes = [2, 32], strides = [1, 1]} : vector<2x128xf32> to vector<2x32xf32>
    %218 = math.tanh %217 : vector<2x32xf32>
    %219 = vector.extract_strided_slice %204 {offsets = [0, 96], sizes = [2, 32], strides = [1, 1]} : vector<2x128xf32> to vector<2x32xf32>
    %220 = arith.negf %219 : vector<2x32xf32>
    %221 = math.exp %220 : vector<2x32xf32>
    %cst_55 = arith.constant 1.000000e+00 : f32
    %222 = vector.broadcast %cst_55 : f32 to vector<2x32xf32>
    %223 = arith.addf %222, %221 : vector<2x32xf32>
    %224 = arith.divf %222, %223 : vector<2x32xf32>
    %225 = arith.mulf %216, %170 : vector<2x32xf32>
    %226 = arith.mulf %210, %218 : vector<2x32xf32>
    %227 = arith.addf %225, %226 : vector<2x32xf32>
    %228 = math.tanh %227 : vector<2x32xf32>
    %229 = arith.mulf %224, %228 : vector<2x32xf32>
    %cst_56 = arith.constant dense<0.000000e+00> : vector<2x128xf32>
    %230 = tpu.matmul %172, %26, %cst_56 {dimension_numbers = #tpu.dot_dimension_numbers<[1], [0], [0], [1], [0, 0, 1, 1], [], []>} : vector<2x32xf32>, vector<32x128xf32>, vector<2x128xf32> -> vector<2x128xf32>
    %cst_57 = arith.constant dense<0.000000e+00> : vector<2x128xf32>
    %231 = tpu.matmul %202, %27, %cst_57 {dimension_numbers = #tpu.dot_dimension_numbers<[1], [0], [0], [1], [0, 0, 1, 1], [], []>} : vector<2x32xf32>, vector<32x128xf32>, vector<2x128xf32> -> vector<2x128xf32>
    %232 = arith.addf %230, %231 : vector<2x128xf32>
    %233 = vector.broadcast %28 : vector<1x128xf32> to vector<2x128xf32>
    %234 = arith.addf %232, %233 : vector<2x128xf32>
    %235 = vector.extract_strided_slice %234 {offsets = [0, 0], sizes = [2, 32], strides = [1, 1]} : vector<2x128xf32> to vector<2x32xf32>
    %236 = arith.negf %235 : vector<2x32xf32>
    %237 = math.exp %236 : vector<2x32xf32>
    %cst_58 = arith.constant 1.000000e+00 : f32
    %238 = vector.broadcast %cst_58 : f32 to vector<2x32xf32>
    %239 = arith.addf %238, %237 : vector<2x32xf32>
    %240 = arith.divf %238, %239 : vector<2x32xf32>
    %241 = vector.extract_strided_slice %234 {offsets = [0, 32], sizes = [2, 32], strides = [1, 1]} : vector<2x128xf32> to vector<2x32xf32>
    %242 = arith.negf %241 : vector<2x32xf32>
    %243 = math.exp %242 : vector<2x32xf32>
    %cst_59 = arith.constant 1.000000e+00 : f32
    %244 = vector.broadcast %cst_59 : f32 to vector<2x32xf32>
    %245 = arith.addf %244, %243 : vector<2x32xf32>
    %246 = arith.divf %244, %245 : vector<2x32xf32>
    %247 = vector.extract_strided_slice %234 {offsets = [0, 64], sizes = [2, 32], strides = [1, 1]} : vector<2x128xf32> to vector<2x32xf32>
    %248 = math.tanh %247 : vector<2x32xf32>
    %249 = vector.extract_strided_slice %234 {offsets = [0, 96], sizes = [2, 32], strides = [1, 1]} : vector<2x128xf32> to vector<2x32xf32>
    %250 = arith.negf %249 : vector<2x32xf32>
    %251 = math.exp %250 : vector<2x32xf32>
    %cst_60 = arith.constant 1.000000e+00 : f32
    %252 = vector.broadcast %cst_60 : f32 to vector<2x32xf32>
    %253 = arith.addf %252, %251 : vector<2x32xf32>
    %254 = arith.divf %252, %253 : vector<2x32xf32>
    %255 = arith.mulf %246, %200 : vector<2x32xf32>
    %256 = arith.mulf %240, %248 : vector<2x32xf32>
    %257 = arith.addf %255, %256 : vector<2x32xf32>
    %258 = math.tanh %257 : vector<2x32xf32>
    %259 = arith.mulf %254, %258 : vector<2x32xf32>
    %cst_61 = arith.constant dense<0.000000e+00> : vector<2x128xf32>
    %260 = tpu.matmul %229, %24, %cst_61 {dimension_numbers = #tpu.dot_dimension_numbers<[1], [0], [0], [1], [0, 0, 1, 1], [], []>} : vector<2x32xf32>, vector<32x128xf32>, vector<2x128xf32> -> vector<2x128xf32>
    %261 = arith.addf %260, %48 : vector<2x128xf32>
    %262 = vector.extract_strided_slice %261 {offsets = [0, 0], sizes = [2, 32], strides = [1, 1]} : vector<2x128xf32> to vector<2x32xf32>
    %263 = arith.negf %262 : vector<2x32xf32>
    %264 = math.exp %263 : vector<2x32xf32>
    %cst_62 = arith.constant 1.000000e+00 : f32
    %265 = vector.broadcast %cst_62 : f32 to vector<2x32xf32>
    %266 = arith.addf %265, %264 : vector<2x32xf32>
    %267 = arith.divf %265, %266 : vector<2x32xf32>
    %268 = vector.extract_strided_slice %261 {offsets = [0, 32], sizes = [2, 32], strides = [1, 1]} : vector<2x128xf32> to vector<2x32xf32>
    %269 = arith.negf %268 : vector<2x32xf32>
    %270 = math.exp %269 : vector<2x32xf32>
    %cst_63 = arith.constant 1.000000e+00 : f32
    %271 = vector.broadcast %cst_63 : f32 to vector<2x32xf32>
    %272 = arith.addf %271, %270 : vector<2x32xf32>
    %273 = arith.divf %271, %272 : vector<2x32xf32>
    %274 = vector.extract_strided_slice %261 {offsets = [0, 64], sizes = [2, 32], strides = [1, 1]} : vector<2x128xf32> to vector<2x32xf32>
    %275 = math.tanh %274 : vector<2x32xf32>
    %276 = vector.extract_strided_slice %261 {offsets = [0, 96], sizes = [2, 32], strides = [1, 1]} : vector<2x128xf32> to vector<2x32xf32>
    %277 = arith.negf %276 : vector<2x32xf32>
    %278 = math.exp %277 : vector<2x32xf32>
    %cst_64 = arith.constant 1.000000e+00 : f32
    %279 = vector.broadcast %cst_64 : f32 to vector<2x32xf32>
    %280 = arith.addf %279, %278 : vector<2x32xf32>
    %281 = arith.divf %279, %280 : vector<2x32xf32>
    %282 = arith.mulf %273, %227 : vector<2x32xf32>
    %283 = arith.mulf %267, %275 : vector<2x32xf32>
    %284 = arith.addf %282, %283 : vector<2x32xf32>
    %285 = math.tanh %284 : vector<2x32xf32>
    %286 = arith.mulf %281, %285 : vector<2x32xf32>
    %cst_65 = arith.constant dense<0.000000e+00> : vector<2x128xf32>
    %287 = tpu.matmul %229, %26, %cst_65 {dimension_numbers = #tpu.dot_dimension_numbers<[1], [0], [0], [1], [0, 0, 1, 1], [], []>} : vector<2x32xf32>, vector<32x128xf32>, vector<2x128xf32> -> vector<2x128xf32>
    %cst_66 = arith.constant dense<0.000000e+00> : vector<2x128xf32>
    %288 = tpu.matmul %259, %27, %cst_66 {dimension_numbers = #tpu.dot_dimension_numbers<[1], [0], [0], [1], [0, 0, 1, 1], [], []>} : vector<2x32xf32>, vector<32x128xf32>, vector<2x128xf32> -> vector<2x128xf32>
    %289 = arith.addf %287, %288 : vector<2x128xf32>
    %290 = vector.broadcast %28 : vector<1x128xf32> to vector<2x128xf32>
    %291 = arith.addf %289, %290 : vector<2x128xf32>
    %292 = vector.extract_strided_slice %291 {offsets = [0, 0], sizes = [2, 32], strides = [1, 1]} : vector<2x128xf32> to vector<2x32xf32>
    %293 = arith.negf %292 : vector<2x32xf32>
    %294 = math.exp %293 : vector<2x32xf32>
    %cst_67 = arith.constant 1.000000e+00 : f32
    %295 = vector.broadcast %cst_67 : f32 to vector<2x32xf32>
    %296 = arith.addf %295, %294 : vector<2x32xf32>
    %297 = arith.divf %295, %296 : vector<2x32xf32>
    %298 = vector.extract_strided_slice %291 {offsets = [0, 32], sizes = [2, 32], strides = [1, 1]} : vector<2x128xf32> to vector<2x32xf32>
    %299 = arith.negf %298 : vector<2x32xf32>
    %300 = math.exp %299 : vector<2x32xf32>
    %cst_68 = arith.constant 1.000000e+00 : f32
    %301 = vector.broadcast %cst_68 : f32 to vector<2x32xf32>
    %302 = arith.addf %301, %300 : vector<2x32xf32>
    %303 = arith.divf %301, %302 : vector<2x32xf32>
    %304 = vector.extract_strided_slice %291 {offsets = [0, 64], sizes = [2, 32], strides = [1, 1]} : vector<2x128xf32> to vector<2x32xf32>
    %305 = math.tanh %304 : vector<2x32xf32>
    %306 = vector.extract_strided_slice %291 {offsets = [0, 96], sizes = [2, 32], strides = [1, 1]} : vector<2x128xf32> to vector<2x32xf32>
    %307 = arith.negf %306 : vector<2x32xf32>
    %308 = math.exp %307 : vector<2x32xf32>
    %cst_69 = arith.constant 1.000000e+00 : f32
    %309 = vector.broadcast %cst_69 : f32 to vector<2x32xf32>
    %310 = arith.addf %309, %308 : vector<2x32xf32>
    %311 = arith.divf %309, %310 : vector<2x32xf32>
    %312 = arith.mulf %303, %257 : vector<2x32xf32>
    %313 = arith.mulf %297, %305 : vector<2x32xf32>
    %314 = arith.addf %312, %313 : vector<2x32xf32>
    %315 = math.tanh %314 : vector<2x32xf32>
    %316 = arith.mulf %311, %315 : vector<2x32xf32>
    %cst_70 = arith.constant dense<0.000000e+00> : vector<2x128xf32>
    %317 = tpu.matmul %286, %24, %cst_70 {dimension_numbers = #tpu.dot_dimension_numbers<[1], [0], [0], [1], [0, 0, 1, 1], [], []>} : vector<2x32xf32>, vector<32x128xf32>, vector<2x128xf32> -> vector<2x128xf32>
    %318 = arith.addf %317, %52 : vector<2x128xf32>
    %319 = vector.extract_strided_slice %318 {offsets = [0, 0], sizes = [2, 32], strides = [1, 1]} : vector<2x128xf32> to vector<2x32xf32>
    %320 = arith.negf %319 : vector<2x32xf32>
    %321 = math.exp %320 : vector<2x32xf32>
    %cst_71 = arith.constant 1.000000e+00 : f32
    %322 = vector.broadcast %cst_71 : f32 to vector<2x32xf32>
    %323 = arith.addf %322, %321 : vector<2x32xf32>
    %324 = arith.divf %322, %323 : vector<2x32xf32>
    %325 = vector.extract_strided_slice %318 {offsets = [0, 32], sizes = [2, 32], strides = [1, 1]} : vector<2x128xf32> to vector<2x32xf32>
    %326 = arith.negf %325 : vector<2x32xf32>
    %327 = math.exp %326 : vector<2x32xf32>
    %cst_72 = arith.constant 1.000000e+00 : f32
    %328 = vector.broadcast %cst_72 : f32 to vector<2x32xf32>
    %329 = arith.addf %328, %327 : vector<2x32xf32>
    %330 = arith.divf %328, %329 : vector<2x32xf32>
    %331 = vector.extract_strided_slice %318 {offsets = [0, 64], sizes = [2, 32], strides = [1, 1]} : vector<2x128xf32> to vector<2x32xf32>
    %332 = math.tanh %331 : vector<2x32xf32>
    %333 = vector.extract_strided_slice %318 {offsets = [0, 96], sizes = [2, 32], strides = [1, 1]} : vector<2x128xf32> to vector<2x32xf32>
    %334 = arith.negf %333 : vector<2x32xf32>
    %335 = math.exp %334 : vector<2x32xf32>
    %cst_73 = arith.constant 1.000000e+00 : f32
    %336 = vector.broadcast %cst_73 : f32 to vector<2x32xf32>
    %337 = arith.addf %336, %335 : vector<2x32xf32>
    %338 = arith.divf %336, %337 : vector<2x32xf32>
    %339 = arith.mulf %330, %284 : vector<2x32xf32>
    %340 = arith.mulf %324, %332 : vector<2x32xf32>
    %341 = arith.addf %339, %340 : vector<2x32xf32>
    %342 = math.tanh %341 : vector<2x32xf32>
    %343 = arith.mulf %338, %342 : vector<2x32xf32>
    %cst_74 = arith.constant dense<0.000000e+00> : vector<2x128xf32>
    %344 = tpu.matmul %286, %26, %cst_74 {dimension_numbers = #tpu.dot_dimension_numbers<[1], [0], [0], [1], [0, 0, 1, 1], [], []>} : vector<2x32xf32>, vector<32x128xf32>, vector<2x128xf32> -> vector<2x128xf32>
    %cst_75 = arith.constant dense<0.000000e+00> : vector<2x128xf32>
    %345 = tpu.matmul %316, %27, %cst_75 {dimension_numbers = #tpu.dot_dimension_numbers<[1], [0], [0], [1], [0, 0, 1, 1], [], []>} : vector<2x32xf32>, vector<32x128xf32>, vector<2x128xf32> -> vector<2x128xf32>
    %346 = arith.addf %344, %345 : vector<2x128xf32>
    %347 = vector.broadcast %28 : vector<1x128xf32> to vector<2x128xf32>
    %348 = arith.addf %346, %347 : vector<2x128xf32>
    %349 = vector.extract_strided_slice %348 {offsets = [0, 0], sizes = [2, 32], strides = [1, 1]} : vector<2x128xf32> to vector<2x32xf32>
    %350 = arith.negf %349 : vector<2x32xf32>
    %351 = math.exp %350 : vector<2x32xf32>
    %cst_76 = arith.constant 1.000000e+00 : f32
    %352 = vector.broadcast %cst_76 : f32 to vector<2x32xf32>
    %353 = arith.addf %352, %351 : vector<2x32xf32>
    %354 = arith.divf %352, %353 : vector<2x32xf32>
    %355 = vector.extract_strided_slice %348 {offsets = [0, 32], sizes = [2, 32], strides = [1, 1]} : vector<2x128xf32> to vector<2x32xf32>
    %356 = arith.negf %355 : vector<2x32xf32>
    %357 = math.exp %356 : vector<2x32xf32>
    %cst_77 = arith.constant 1.000000e+00 : f32
    %358 = vector.broadcast %cst_77 : f32 to vector<2x32xf32>
    %359 = arith.addf %358, %357 : vector<2x32xf32>
    %360 = arith.divf %358, %359 : vector<2x32xf32>
    %361 = vector.extract_strided_slice %348 {offsets = [0, 64], sizes = [2, 32], strides = [1, 1]} : vector<2x128xf32> to vector<2x32xf32>
    %362 = math.tanh %361 : vector<2x32xf32>
    %363 = vector.extract_strided_slice %348 {offsets = [0, 96], sizes = [2, 32], strides = [1, 1]} : vector<2x128xf32> to vector<2x32xf32>
    %364 = arith.negf %363 : vector<2x32xf32>
    %365 = math.exp %364 : vector<2x32xf32>
    %cst_78 = arith.constant 1.000000e+00 : f32
    %366 = vector.broadcast %cst_78 : f32 to vector<2x32xf32>
    %367 = arith.addf %366, %365 : vector<2x32xf32>
    %368 = arith.divf %366, %367 : vector<2x32xf32>
    %369 = arith.mulf %360, %314 : vector<2x32xf32>
    %370 = arith.mulf %354, %362 : vector<2x32xf32>
    %371 = arith.addf %369, %370 : vector<2x32xf32>
    %372 = math.tanh %371 : vector<2x32xf32>
    %373 = arith.mulf %368, %372 : vector<2x32xf32>
    %cst_79 = arith.constant dense<0.000000e+00> : vector<2x128xf32>
    %374 = tpu.matmul %343, %24, %cst_79 {dimension_numbers = #tpu.dot_dimension_numbers<[1], [0], [0], [1], [0, 0, 1, 1], [], []>} : vector<2x32xf32>, vector<32x128xf32>, vector<2x128xf32> -> vector<2x128xf32>
    %375 = arith.addf %374, %56 : vector<2x128xf32>
    %376 = vector.extract_strided_slice %375 {offsets = [0, 0], sizes = [2, 32], strides = [1, 1]} : vector<2x128xf32> to vector<2x32xf32>
    %377 = arith.negf %376 : vector<2x32xf32>
    %378 = math.exp %377 : vector<2x32xf32>
    %cst_80 = arith.constant 1.000000e+00 : f32
    %379 = vector.broadcast %cst_80 : f32 to vector<2x32xf32>
    %380 = arith.addf %379, %378 : vector<2x32xf32>
    %381 = arith.divf %379, %380 : vector<2x32xf32>
    %382 = vector.extract_strided_slice %375 {offsets = [0, 32], sizes = [2, 32], strides = [1, 1]} : vector<2x128xf32> to vector<2x32xf32>
    %383 = arith.negf %382 : vector<2x32xf32>
    %384 = math.exp %383 : vector<2x32xf32>
    %cst_81 = arith.constant 1.000000e+00 : f32
    %385 = vector.broadcast %cst_81 : f32 to vector<2x32xf32>
    %386 = arith.addf %385, %384 : vector<2x32xf32>
    %387 = arith.divf %385, %386 : vector<2x32xf32>
    %388 = vector.extract_strided_slice %375 {offsets = [0, 64], sizes = [2, 32], strides = [1, 1]} : vector<2x128xf32> to vector<2x32xf32>
    %389 = math.tanh %388 : vector<2x32xf32>
    %390 = vector.extract_strided_slice %375 {offsets = [0, 96], sizes = [2, 32], strides = [1, 1]} : vector<2x128xf32> to vector<2x32xf32>
    %391 = arith.negf %390 : vector<2x32xf32>
    %392 = math.exp %391 : vector<2x32xf32>
    %cst_82 = arith.constant 1.000000e+00 : f32
    %393 = vector.broadcast %cst_82 : f32 to vector<2x32xf32>
    %394 = arith.addf %393, %392 : vector<2x32xf32>
    %395 = arith.divf %393, %394 : vector<2x32xf32>
    %396 = arith.mulf %387, %341 : vector<2x32xf32>
    %397 = arith.mulf %381, %389 : vector<2x32xf32>
    %398 = arith.addf %396, %397 : vector<2x32xf32>
    %399 = math.tanh %398 : vector<2x32xf32>
    %400 = arith.mulf %395, %399 : vector<2x32xf32>
    %cst_83 = arith.constant dense<0.000000e+00> : vector<2x128xf32>
    %401 = tpu.matmul %343, %26, %cst_83 {dimension_numbers = #tpu.dot_dimension_numbers<[1], [0], [0], [1], [0, 0, 1, 1], [], []>} : vector<2x32xf32>, vector<32x128xf32>, vector<2x128xf32> -> vector<2x128xf32>
    %cst_84 = arith.constant dense<0.000000e+00> : vector<2x128xf32>
    %402 = tpu.matmul %373, %27, %cst_84 {dimension_numbers = #tpu.dot_dimension_numbers<[1], [0], [0], [1], [0, 0, 1, 1], [], []>} : vector<2x32xf32>, vector<32x128xf32>, vector<2x128xf32> -> vector<2x128xf32>
    %403 = arith.addf %401, %402 : vector<2x128xf32>
    %404 = vector.broadcast %28 : vector<1x128xf32> to vector<2x128xf32>
    %405 = arith.addf %403, %404 : vector<2x128xf32>
    %406 = vector.extract_strided_slice %405 {offsets = [0, 0], sizes = [2, 32], strides = [1, 1]} : vector<2x128xf32> to vector<2x32xf32>
    %407 = arith.negf %406 : vector<2x32xf32>
    %408 = math.exp %407 : vector<2x32xf32>
    %cst_85 = arith.constant 1.000000e+00 : f32
    %409 = vector.broadcast %cst_85 : f32 to vector<2x32xf32>
    %410 = arith.addf %409, %408 : vector<2x32xf32>
    %411 = arith.divf %409, %410 : vector<2x32xf32>
    %412 = vector.extract_strided_slice %405 {offsets = [0, 32], sizes = [2, 32], strides = [1, 1]} : vector<2x128xf32> to vector<2x32xf32>
    %413 = arith.negf %412 : vector<2x32xf32>
    %414 = math.exp %413 : vector<2x32xf32>
    %cst_86 = arith.constant 1.000000e+00 : f32
    %415 = vector.broadcast %cst_86 : f32 to vector<2x32xf32>
    %416 = arith.addf %415, %414 : vector<2x32xf32>
    %417 = arith.divf %415, %416 : vector<2x32xf32>
    %418 = vector.extract_strided_slice %405 {offsets = [0, 64], sizes = [2, 32], strides = [1, 1]} : vector<2x128xf32> to vector<2x32xf32>
    %419 = math.tanh %418 : vector<2x32xf32>
    %420 = vector.extract_strided_slice %405 {offsets = [0, 96], sizes = [2, 32], strides = [1, 1]} : vector<2x128xf32> to vector<2x32xf32>
    %421 = arith.negf %420 : vector<2x32xf32>
    %422 = math.exp %421 : vector<2x32xf32>
    %cst_87 = arith.constant 1.000000e+00 : f32
    %423 = vector.broadcast %cst_87 : f32 to vector<2x32xf32>
    %424 = arith.addf %423, %422 : vector<2x32xf32>
    %425 = arith.divf %423, %424 : vector<2x32xf32>
    %426 = arith.mulf %417, %371 : vector<2x32xf32>
    %427 = arith.mulf %411, %419 : vector<2x32xf32>
    %428 = arith.addf %426, %427 : vector<2x32xf32>
    %429 = math.tanh %428 : vector<2x32xf32>
    %430 = arith.mulf %425, %429 : vector<2x32xf32>
    %cst_88 = arith.constant dense<0.000000e+00> : vector<2x128xf32>
    %431 = tpu.matmul %400, %24, %cst_88 {dimension_numbers = #tpu.dot_dimension_numbers<[1], [0], [0], [1], [0, 0, 1, 1], [], []>} : vector<2x32xf32>, vector<32x128xf32>, vector<2x128xf32> -> vector<2x128xf32>
    %432 = arith.addf %431, %60 : vector<2x128xf32>
    %433 = vector.extract_strided_slice %432 {offsets = [0, 0], sizes = [2, 32], strides = [1, 1]} : vector<2x128xf32> to vector<2x32xf32>
    %434 = arith.negf %433 : vector<2x32xf32>
    %435 = math.exp %434 : vector<2x32xf32>
    %cst_89 = arith.constant 1.000000e+00 : f32
    %436 = vector.broadcast %cst_89 : f32 to vector<2x32xf32>
    %437 = arith.addf %436, %435 : vector<2x32xf32>
    %438 = arith.divf %436, %437 : vector<2x32xf32>
    %439 = vector.extract_strided_slice %432 {offsets = [0, 32], sizes = [2, 32], strides = [1, 1]} : vector<2x128xf32> to vector<2x32xf32>
    %440 = arith.negf %439 : vector<2x32xf32>
    %441 = math.exp %440 : vector<2x32xf32>
    %cst_90 = arith.constant 1.000000e+00 : f32
    %442 = vector.broadcast %cst_90 : f32 to vector<2x32xf32>
    %443 = arith.addf %442, %441 : vector<2x32xf32>
    %444 = arith.divf %442, %443 : vector<2x32xf32>
    %445 = vector.extract_strided_slice %432 {offsets = [0, 64], sizes = [2, 32], strides = [1, 1]} : vector<2x128xf32> to vector<2x32xf32>
    %446 = math.tanh %445 : vector<2x32xf32>
    %447 = vector.extract_strided_slice %432 {offsets = [0, 96], sizes = [2, 32], strides = [1, 1]} : vector<2x128xf32> to vector<2x32xf32>
    %448 = arith.negf %447 : vector<2x32xf32>
    %449 = math.exp %448 : vector<2x32xf32>
    %cst_91 = arith.constant 1.000000e+00 : f32
    %450 = vector.broadcast %cst_91 : f32 to vector<2x32xf32>
    %451 = arith.addf %450, %449 : vector<2x32xf32>
    %452 = arith.divf %450, %451 : vector<2x32xf32>
    %453 = arith.mulf %444, %398 : vector<2x32xf32>
    %454 = arith.mulf %438, %446 : vector<2x32xf32>
    %455 = arith.addf %453, %454 : vector<2x32xf32>
    %456 = math.tanh %455 : vector<2x32xf32>
    %457 = arith.mulf %452, %456 : vector<2x32xf32>
    %cst_92 = arith.constant dense<0.000000e+00> : vector<2x128xf32>
    %458 = tpu.matmul %400, %26, %cst_92 {dimension_numbers = #tpu.dot_dimension_numbers<[1], [0], [0], [1], [0, 0, 1, 1], [], []>} : vector<2x32xf32>, vector<32x128xf32>, vector<2x128xf32> -> vector<2x128xf32>
    %cst_93 = arith.constant dense<0.000000e+00> : vector<2x128xf32>
    %459 = tpu.matmul %430, %27, %cst_93 {dimension_numbers = #tpu.dot_dimension_numbers<[1], [0], [0], [1], [0, 0, 1, 1], [], []>} : vector<2x32xf32>, vector<32x128xf32>, vector<2x128xf32> -> vector<2x128xf32>
    %460 = arith.addf %458, %459 : vector<2x128xf32>
    %461 = vector.broadcast %28 : vector<1x128xf32> to vector<2x128xf32>
    %462 = arith.addf %460, %461 : vector<2x128xf32>
    %463 = vector.extract_strided_slice %462 {offsets = [0, 0], sizes = [2, 32], strides = [1, 1]} : vector<2x128xf32> to vector<2x32xf32>
    %464 = arith.negf %463 : vector<2x32xf32>
    %465 = math.exp %464 : vector<2x32xf32>
    %cst_94 = arith.constant 1.000000e+00 : f32
    %466 = vector.broadcast %cst_94 : f32 to vector<2x32xf32>
    %467 = arith.addf %466, %465 : vector<2x32xf32>
    %468 = arith.divf %466, %467 : vector<2x32xf32>
    %469 = vector.extract_strided_slice %462 {offsets = [0, 32], sizes = [2, 32], strides = [1, 1]} : vector<2x128xf32> to vector<2x32xf32>
    %470 = arith.negf %469 : vector<2x32xf32>
    %471 = math.exp %470 : vector<2x32xf32>
    %cst_95 = arith.constant 1.000000e+00 : f32
    %472 = vector.broadcast %cst_95 : f32 to vector<2x32xf32>
    %473 = arith.addf %472, %471 : vector<2x32xf32>
    %474 = arith.divf %472, %473 : vector<2x32xf32>
    %475 = vector.extract_strided_slice %462 {offsets = [0, 64], sizes = [2, 32], strides = [1, 1]} : vector<2x128xf32> to vector<2x32xf32>
    %476 = math.tanh %475 : vector<2x32xf32>
    %477 = vector.extract_strided_slice %462 {offsets = [0, 96], sizes = [2, 32], strides = [1, 1]} : vector<2x128xf32> to vector<2x32xf32>
    %478 = arith.negf %477 : vector<2x32xf32>
    %479 = math.exp %478 : vector<2x32xf32>
    %cst_96 = arith.constant 1.000000e+00 : f32
    %480 = vector.broadcast %cst_96 : f32 to vector<2x32xf32>
    %481 = arith.addf %480, %479 : vector<2x32xf32>
    %482 = arith.divf %480, %481 : vector<2x32xf32>
    %483 = arith.mulf %474, %428 : vector<2x32xf32>
    %484 = arith.mulf %468, %476 : vector<2x32xf32>
    %485 = arith.addf %483, %484 : vector<2x32xf32>
    %486 = math.tanh %485 : vector<2x32xf32>
    %487 = arith.mulf %482, %486 : vector<2x32xf32>
    %cst_97 = arith.constant dense<0.000000e+00> : vector<2x128xf32>
    %488 = tpu.matmul %457, %26, %cst_97 {dimension_numbers = #tpu.dot_dimension_numbers<[1], [0], [0], [1], [0, 0, 1, 1], [], []>} : vector<2x32xf32>, vector<32x128xf32>, vector<2x128xf32> -> vector<2x128xf32>
    %cst_98 = arith.constant dense<0.000000e+00> : vector<2x128xf32>
    %489 = tpu.matmul %487, %27, %cst_98 {dimension_numbers = #tpu.dot_dimension_numbers<[1], [0], [0], [1], [0, 0, 1, 1], [], []>} : vector<2x32xf32>, vector<32x128xf32>, vector<2x128xf32> -> vector<2x128xf32>
    %490 = arith.addf %488, %489 : vector<2x128xf32>
    %491 = vector.broadcast %28 : vector<1x128xf32> to vector<2x128xf32>
    %492 = arith.addf %490, %491 : vector<2x128xf32>
    %493 = vector.extract_strided_slice %492 {offsets = [0, 0], sizes = [2, 32], strides = [1, 1]} : vector<2x128xf32> to vector<2x32xf32>
    %494 = arith.negf %493 : vector<2x32xf32>
    %495 = math.exp %494 : vector<2x32xf32>
    %cst_99 = arith.constant 1.000000e+00 : f32
    %496 = vector.broadcast %cst_99 : f32 to vector<2x32xf32>
    %497 = arith.addf %496, %495 : vector<2x32xf32>
    %498 = arith.divf %496, %497 : vector<2x32xf32>
    %499 = vector.extract_strided_slice %492 {offsets = [0, 32], sizes = [2, 32], strides = [1, 1]} : vector<2x128xf32> to vector<2x32xf32>
    %500 = arith.negf %499 : vector<2x32xf32>
    %501 = math.exp %500 : vector<2x32xf32>
    %cst_100 = arith.constant 1.000000e+00 : f32
    %502 = vector.broadcast %cst_100 : f32 to vector<2x32xf32>
    %503 = arith.addf %502, %501 : vector<2x32xf32>
    %504 = arith.divf %502, %503 : vector<2x32xf32>
    %505 = vector.extract_strided_slice %492 {offsets = [0, 64], sizes = [2, 32], strides = [1, 1]} : vector<2x128xf32> to vector<2x32xf32>
    %506 = math.tanh %505 : vector<2x32xf32>
    %507 = vector.extract_strided_slice %492 {offsets = [0, 96], sizes = [2, 32], strides = [1, 1]} : vector<2x128xf32> to vector<2x32xf32>
    %508 = arith.negf %507 : vector<2x32xf32>
    %509 = math.exp %508 : vector<2x32xf32>
    %cst_101 = arith.constant 1.000000e+00 : f32
    %510 = vector.broadcast %cst_101 : f32 to vector<2x32xf32>
    %511 = arith.addf %510, %509 : vector<2x32xf32>
    %512 = arith.divf %510, %511 : vector<2x32xf32>
    %513 = arith.mulf %504, %485 : vector<2x32xf32>
    %514 = arith.mulf %498, %506 : vector<2x32xf32>
    %515 = arith.addf %513, %514 : vector<2x32xf32>
    %516 = math.tanh %515 : vector<2x32xf32>
    %517 = arith.mulf %512, %516 : vector<2x32xf32>
    %c0_102 = arith.constant 0 : index
    %c0_103 = arith.constant 0 : index
    %518 = vector.load %arg9[%c0_102, %c0_103] : memref<32x16xf32, #tpu.memory_space<vmem>>, vector<32x16xf32>
    %cst_104 = arith.constant dense<0.000000e+00> : vector<2x16xf32>
    %519 = tpu.matmul %517, %518, %cst_104 {dimension_numbers = #tpu.dot_dimension_numbers<[1], [0], [0], [1], [0, 0, 1, 1], [], []>} : vector<2x32xf32>, vector<32x16xf32>, vector<2x16xf32> -> vector<2x16xf32>
    %c0_105 = arith.constant 0 : index
    %c0_106 = arith.constant 0 : index
    %520 = vector.load %arg10[%c0_105, %c0_106] : memref<1x16xf32, #tpu.memory_space<vmem>>, vector<1x16xf32>
    %521 = vector.broadcast %520 : vector<1x16xf32> to vector<2x16xf32>
    %522 = arith.addf %519, %521 : vector<2x16xf32>
    %c0_107 = arith.constant 0 : index
    %c0_108 = arith.constant 0 : index
    %523 = vector.load %arg11[%c0_107, %c0_108] : memref<2x16xf32, #tpu.memory_space<vmem>>, vector<2x16xf32>
    tpu.vector_store %arg11[%c0_107, %c0_108], %522 {strides = array<i32>} : memref<2x16xf32, #tpu.memory_space<vmem>>, vector<2x16xf32>,
    return
  }
}

</mosaic_0001>

<bundles_post_ra>
// kernel: tpu_custom_call.1
= control target key start
LH: loop header
LB: loop body
LE: loop exit
PB: predicated region body
PF: predicated region fallthrough
CT: control target
= control target key end

     0   :  { %16 = vsyncpa [#allocation3], 0  ;;  %s4364_s0 = inlined_call_operand.vmem [shape: f32[2,32], index: 0, kind: input, shape index: {}]   ;;  %s4365_s1 = inlined_call_operand.vmem [shape: f32[1,32], index: 1, kind: input, shape index: {}]   ;;  %s4366_s2 = inlined_call_operand.vmem [shape: f32[1,32], index: 2, kind: input, shape index: {}]   ;;  %s4367_s3 = inlined_call_operand.vmem [shape: f32[4,128], index: 3, kind: input, shape index: {}]   ;;  %s4368_s4 = inlined_call_operand.vmem [shape: f32[32,128], index: 4, kind: input, shape index: {}]   ;;  %s4369_s5 = inlined_call_operand.vmem [shape: f32[1,128], index: 5, kind: input, shape index: {}]   ;;  %s4370_s6 = inlined_call_operand.hbm [shape: f32[32,128], index: 6, kind: input, shape index: {}]   ;;  %s4371_s7 = inlined_call_operand.hbm [shape: f32[32,128], index: 7, kind: input, shape index: {}]   ;;  %s4372_s8 = inlined_call_operand.vmem [shape: f32[1,128], index: 8, kind: input, shape index: {}]   ;;  %s4373_s9 = inlined_call_operand.vmem [shape: f32[32,16], index: 9, kind: input, shape index: {}]   ;;  %s4374_s10 = inlined_call_operand.vmem [shape: f32[1,16], index: 10, kind: input, shape index: {}]   ;;  %s4375_s11 = inlined_call_operand.hbm [shape: f32[2,16], index: 11, kind: output, shape index: {}]  }
   0x1   :  { %17 = vsyncpa [#allocation6], 0 }
   0x2   :  { %18 = vsyncpa [#allocation4], 0  ;;  %s3718_s17 = smov [#allocation2]  }
   0x3   :  { %s36_s18 = sshll.u32 %s3718_s17, 4  ;;  %s37_s18 = int_to_ptr.vmem [resolvable:$true] %s36_s18 }
   0x4   :  { %s3660_s19 = scalar_lea.vmem %s37_s18, 512  ;;  %p3665_p1 = scmp.lt.s32.totalorder %s37_s18, %s37_s18 }
   0x5   :  { %p3661_p0 = scmp.ne.s32.totalorder %s37_s18, %s3660_s19  ;;  %p3666_p2 = scmp.lt.s32.totalorder %s3660_s19, %s3660_s19 }
   0x7   :  { %p3667_p3 = por %p3666_p2, %p3665_p1 }
   0x9   :  { %p3668_p4 = pnand %p3667_p3, %p3661_p0 }
   0xb   :  { %3671 = shalt.err (!%p3668_p4)
}
   0xc   :  { %s3719_s20 = smov 128   ;;  %s3720_s21 = smov 8  }
   0xd   :  { %42 = dma.hbm_to_vmem [thread:$0]  %s4370_s6, 512, %s37_s18, [#allocation3], %s3719_s20, %s3719_s20, %s3720_s21  }
   0xe   :  { %s3721_s24 = smov [#allocation5]  }
   0xf   :  { %s48_s25 = sshll.u32 %s3721_s24, 4  ;;  %s49_s25 = int_to_ptr.vmem [resolvable:$true] %s48_s25 }
  0x10   :  { %s3680_s26 = scalar_lea.vmem %s49_s25, 512  ;;  %p3685_p6 = scmp.lt.s32.totalorder %s49_s25, %s49_s25 }
  0x11   :  { %p3681_p5 = scmp.ne.s32.totalorder %s49_s25, %s3680_s26  ;;  %p3686_p7 = scmp.lt.s32.totalorder %s3680_s26, %s3680_s26 }
  0x13   :  { %p3687_p8 = por %p3686_p7, %p3685_p6 }
  0x15   :  { %p3688_p9 = pnand %p3687_p8, %p3681_p5 }
  0x17   :  { %3691 = shalt.err (!%p3688_p9)
}
  0x18   :  { %54 = dma.hbm_to_vmem [thread:$0]  %s4371_s7, 512, %s49_s25, [#allocation6], %s3719_s20, %s3719_s20, %s3720_s21  }
  0x19   :  { %3712 = dma.done.wait [#allocation3], 512  }
  0x1a   :  { %3713 = vsyncadd [#allocation3], 4294966784 }
  0x1b   :  { %3714 = dma.done.wait [#allocation6], 512  }
  0x1c   :  { %3715 = vsyncadd [#allocation6], 4294966784  ;;  %vm68_vm0 = vcmask 254976   ;;  %v67_v0 = vld [vmem:[%s4364_s0] sm:$0x3]  ;;  %v3722_v7 = vmov 0.0  }
  0x1d   :  { %v69_v1 = vsel %vm68_vm0, %v67_v0, 0.0  ;;  %3177 = vmatprep.subr.mxu1 %v3722_v7  ;;  %v3807_v8 = vld [vmem:[%s4367_s3] sm:$0xf]  ;;  %vm123_vm1 = vcmask 1043456   ;;  %3187 = vmatprep.subr.mxu0 %v3722_v7  ;;  %vm3723_vm2 = vmmov 0   ;;  %vm119_vm3 = vcmask 31744  }
  0x1e   :  { %70 = vadd.xlane.f32.xlu0 %v69_v1  ;;  %3178 = vmatpush3.msk.msra.mxu1 %vm123_vm1, %v3807_v8  ;;  %v2976_v13 = vld [vmem:[%s4365_s1] ss:$0 sm:$0xff]  ;;  %s3724_s14 = smov 104   ;;  %s3725_s15 = smov 120   ;;  %v3854_v20 = vld [vmem:[%s4368_s4 + $0x18] sm:$0xff]  ;;  %v3860_v22 = vld [vmem:[%s4368_s4 + $0x10] sm:$0xff] }
  0x1f   :  { %3179 = vmatprep.mubr.msk.f32.mxu1 %vm3723_vm2, %v3722_v7  ;;  %3188 = vmatpush3.msk.msra.mxu0 %vm123_vm1, %v3807_v8  ;;  %v2977_v15 = vld [vmem:[%s4366_s2] ss:$0 sm:$0xff]  ;;  %s3726_s1 = smov 100   ;;  %s3727_s2 = smov 112   ;;  %v3869_v23 = vld [vmem:[%s4368_s4 + $0x8] sm:$0xff]  ;;  %v3905_v49 = vld [vmem:[#allocation5 + $0x18] sm:$0xff] }
  0x20   :  { %3189 = vmatprep.mubr.msk.f32.mxu0 %vm3723_vm2, %v3722_v7  ;;  %3197 = vmatprep.subr.mxu0 %v3722_v7  ;;  %v3876_v24 = vld [vmem:[%s4368_s4] sm:$0xff]  ;;  %s3728_s26 = smov 64   ;;  %s3729_s27 = smov 32   ;;  %v3910_v50 = vld [vmem:[#allocation5 + $0x10] sm:$0xff]  ;;  %v3914_v51 = vld [vmem:[#allocation5 + $0x8] sm:$0xff]  ;;  %vm715_vm4 = vcmask 261120  }
  0x21   :  { %3182 = vmatprep.subr.mxu1 %v3722_v7  ;;  %v3894_v33 = vld [vmem:[%s4369_s5] ss:$0 sm:$0xff]  ;;  %s3730_s28 = smov 124   ;;  %s3731_s6 = smov 116   ;;  %v3963_v59 = vld [vmem:[#allocation2 + $0x18] sm:$0xff]  ;;  %v3966_v61 = vld [vmem:[#allocation2 + $0x10] sm:$0xff] }
  0x22   :  { %s3732_s29 = smov 108   ;;  %v3918_v52 = vld [vmem:[#allocation5] sm:$0xff]  ;;  %v3972_v62 = vld [vmem:[#allocation2 + $0x8] sm:$0xff]  ;;  %vm2958_vm5 = vcmask 123904  }
  0x23   :  { %v3976_v63 = vld [vmem:[#allocation2] sm:$0xff] }
  0xa7   :  { %v71_v2 = vpop.xlane.xlu0 %70 }
  0xa8   :  { %v72_v3 = vmul.f32 0.03125, %v71_v2 }
  0xaa   :  { %v73_v4 = vsub.f32 %v67_v0, %v72_v3 }
  0xac   :  { %v74_v5 = vmul.f32 %v73_v4, %v73_v4 }
  0xae   :  { %v75_v6 = vsel %vm68_vm0, %v74_v5, 0.0 }
  0xaf   :  { %76 = vadd.xlane.f32.xlu0 %v75_v6 }
 0x138   :  { %v77_v9 = vpop.xlane.xlu0 %76 }
 0x139   :  { %v78_v10 = vmul.f32 0.03125, %v77_v9 }
 0x13b   :  { %v79_v11 = vadd.f32 1e-05, %v78_v10 }
 0x13d   :  { %3508 = vrsqrt.f32 %v79_v11 }
 0x14a   :  { %v3509_v12 = vpop.eup %3508 }
 0x14b   :  { %v81_v14 = vmul.f32 %v3509_v12, %v73_v4 }
 0x14d   :  { %v89_v16 = vmul.f32 %v2976_v13, %v81_v14 }
 0x14f   :  { %v3826_v17 = vadd.f32 %v2977_v15, %v89_v16  ;;  %v4003_v15 = vld [vmem:[%s4372_s8] ss:$0 sm:$0xff] }
 0x151   :  { %567 = vrot.lane.b32.xlu0 %v3826_v17, %s3724_s14  ;;  %271 = vrot.lane.b32.xlu1 %v3826_v17, %s3725_s15 }
 0x152   :  { %3180 = vmatmul.mubr.msk.f32.vlgmr.msra.gmra.mxu1 %vm119_vm3, %v3826_v17 }
 0x153   :  { %3183 = vmatpush3.msk.msra.mxu1 %vm123_vm1, %v3807_v8  ;;  %3184 = vmatprep.mubr.msk.f32.mxu1 %vm3723_vm2, %v3722_v7 }
 0x154   :  { %3192 = vmatprep.subr.mxu1 %v3722_v7 }
 0x155   :  { %641 = vrot.lane.b32.xlu0 %v3826_v17, %s3726_s1  ;;  %419 = vrot.lane.b32.xlu1 %v3826_v17, %s3727_s2 }
 0x1c3   :  { %v272_v18 = vpop.permute.xlu1 %271  ;;  %v568_v21 = vpop.permute.xlu0 %567 }
 0x1c4   :  { %3190 = vmatmul.mubr.msk.f32.vlgmr.msra.gmra.mxu0 %vm119_vm3, %v272_v18 }
 0x1c5   :  { %3198 = vmatpush3.msk.msra.mxu0 %vm123_vm1, %v3807_v8  ;;  %3199 = vmatprep.mubr.msk.f32.mxu0 %vm3723_vm2, %v3722_v7 }
 0x1c6   :  { %3207 = vmatprep.subr.mxu0 %v3722_v7 }
 0x1c7   :  { %v420_v19 = vpop.permute.xlu1 %419  ;;  %v642_v58 = vpop.permute.xlu0 %641 }
 0x1c8   :  { %3200 = vmatmul.mubr.msk.f32.vlgmr.msra.gmra.mxu0 %vm119_vm3, %v420_v19 }
 0x1c9   :  { %3208 = vmatpush3.msk.msra.mxu0 %vm123_vm1, %v3807_v8  ;;  %3209 = vmatprep.mubr.msk.f32.mxu0 %vm3723_vm2, %v3722_v7 }
 0x1ca   :  { %3217 = vmatprep.subr.mxu0 %v3722_v7 }
 0x1cc   :  { %3210 = vmatmul.mubr.msk.f32.vlgmr.msra.gmra.mxu0 %vm119_vm3, %v568_v21 }
 0x1cd   :  { %3218 = vmatpush3.msra.mxu0 %v3854_v20  ;;  %3225 = vmatprep.mubr.msk.f32.mxu0 %vm3723_vm2, %v3722_v7 }
 0x1ce   :  { %3219 = vmatprep.subr.mxu0 %v3722_v7 }
 0x1cf   :  { %3220 = vmatpush3.msra.mxu0 %v3860_v22 }
 0x1d0   :  { %3221 = vmatprep.subr.mxu0 %v3722_v7 }
 0x1d1   :  { %3222 = vmatpush3.msra.mxu0 %v3869_v23 }
 0x1d2   :  { %3223 = vmatprep.subr.mxu0 %v3722_v7 }
 0x1d3   :  { %3224 = vmatpush3.msra.mxu0 %v3876_v24 }
 0x1d4   :  { %3226 = vmatmul.mubr.f32.vlgmr.msra.gmra.mxu0 %v3722_v7  ;;  %3239 = vmatprep.subr.mxu0 %v3722_v7 }
 0x1d5   :  { %3247 = vmatprep.mubr.msk.f32.mxu0 %vm3723_vm2, %v3722_v7  ;;  %3240 = vmatpush3.msra.mxu0 %v3905_v49 }
 0x1d6   :  { %3241 = vmatprep.subr.mxu0 %v3722_v7 }
 0x1d7   :  { %3242 = vmatpush3.msra.mxu0 %v3910_v50 }
 0x1d8   :  { %3243 = vmatprep.subr.mxu0 %v3722_v7 }
 0x1d9   :  { %3244 = vmatpush3.msra.mxu0 %v3914_v51 }
 0x1da   :  { %3245 = vmatprep.subr.mxu0 %v3722_v7 }
 0x1db   :  { %3246 = vmatpush3.msra.mxu0 %v3918_v52 }
 0x1dc   :  { %3248 = vmatmul.mubr.f32.vlgmr.msra.gmra.mxu0 %v3722_v7  ;;  %3261 = vmatprep.subr.mxu0 %v3722_v7 }
 0x1dd   :  { %3262 = vmatpush3.msra.mxu0 %v3854_v20  ;;  %3269 = vmatprep.mubr.msk.f32.mxu0 %vm3723_vm2, %v3722_v7 }
 0x1de   :  { %3263 = vmatprep.subr.mxu0 %v3722_v7 }
 0x1df   :  { %3264 = vmatpush3.msra.mxu0 %v3860_v22 }
 0x1e0   :  { %3265 = vmatprep.subr.mxu0 %v3722_v7 }
 0x1e1   :  { %3266 = vmatpush3.msra.mxu0 %v3869_v23 }
 0x1e2   :  { %3267 = vmatprep.subr.mxu0 %v3722_v7 }
 0x1e3   :  { %3268 = vmatpush3.msra.mxu0 %v3876_v24 }
 0x1e4   :  { %3283 = vmatprep.subr.mxu0 %v3722_v7 }
 0x212   :  { %v193_v25 = vpop.f32.mrf.mxu1 }
 0x213   :  { %v194_v34 = vadd.f32 %v3894_v33, %v193_v25 }
 0x214   :  { %v3181_v26 = vpop.f32.mrf.mxu1 }
 0x284   :  { %v3885_v27 = vpop.f32.mrf.mxu0 }
 0x286   :  { %v3191_v28 = vpop.f32.mrf.mxu0 }
 0x288   :  { %v3887_v29 = vpop.f32.mrf.mxu0 }
 0x28a   :  { %v3201_v30 = vpop.f32.mrf.mxu0 }
 0x28c   :  { %v3889_v31 = vpop.f32.mrf.mxu0 }
 0x28e   :  { %v3211_v32 = vpop.f32.mrf.mxu0 }
 0x294   :  { %v785_v35 = vpop.f32.mrf.mxu0 }
 0x295   :  { %v786_v36 = vadd.f32 %v785_v35, %v194_v34 }
 0x296   :  { %v3227_v37 = vpop.f32.mrf.mxu0 }
 0x297   :  { %3510 = vtanh.f32 %v786_v36  ;;  %v2995_v39 = vmul.f32 -1.442695, %v786_v36 }
 0x299   :  { %3512 = vpow2.f32 %v2995_v39 }
 0x29c   :  { %v978_v0 = vpop.f32.mrf.mxu0 }
 0x29e   :  { %v3249_v1 = vpop.f32.mrf.mxu0 }
 0x2a4   :  { %v3511_v38 = vpop.eup %3510 }
 0x2a5   :  { %798 = vrot.lane.b32.xlu1 %v3511_v38, %s3728_s26 }
 0x2a6   :  { %v3513_v40 = vpop.eup %3512 }
 0x2a7   :  { %v792_v41 = vadd.f32 1.0, %v3513_v40 }
 0x2a9   :  { %3514 = vrcp.f32 %v792_v41 }
 0x2b6   :  { %v3515_v42 = vpop.eup %3514 }
 0x2b7   :  { %v796_v45 = vmul.f32 0.0, %v3515_v42 }
 0x317   :  { %v799_v43 = vpop.permute.xlu1 %798 }
 0x318   :  { %v801_v44 = vmul.f32 %v3515_v42, %v799_v43 }
 0x31a   :  { %803 = vrot.lane.b32.xlu1 %v801_v44, %s3729_s27 }
 0x38c   :  { %v804_v46 = vpop.permute.xlu1 %803 }
 0x38d   :  { %v3899_v47 = vadd.f32 %v804_v46, %v796_v45 }
 0x38f   :  { %3516 = vtanh.f32 %v3899_v47 }
 0x39c   :  { %v3517_v48 = vpop.eup %3516 }
 0x39d   :  { %809 = vrot.lane.b32.xlu1 %v3517_v48, %s3728_s26 }
 0x3a1   :  { %197 = vrot.lane.b32.xlu1 %v3826_v17, %s3730_s28 }
 0x3a5   :  { %345 = vrot.lane.b32.xlu1 %v3826_v17, %s3731_s6  ;;  %s3733_s6 = smov [#allocation7]  }
 0x3a9   :  { %493 = vrot.lane.b32.xlu1 %v3826_v17, %s3732_s29 }
 0x40f   :  { %v810_v53 = vpop.permute.xlu1 %809 }
 0x410   :  { %v812_v54 = vmul.f32 %v3515_v42, %v810_v53 }
 0x412   :  { %814 = vrot.lane.b32.xlu1 %v812_v54, %s3729_s27 }
 0x413   :  { %v198_v55 = vpop.permute.xlu1 %197 }
 0x414   :  { %3185 = vmatmul.mubr.msk.f32.vlgmr.msra.gmra.mxu1 %vm119_vm3, %v198_v55 }
 0x415   :  { %3193 = vmatpush3.msk.msra.mxu1 %vm123_vm1, %v3807_v8  ;;  %3194 = vmatprep.mubr.msk.f32.mxu1 %vm3723_vm2, %v3722_v7 }
 0x416   :  { %3202 = vmatprep.subr.mxu1 %v3722_v7 }
 0x417   :  { %v346_v56 = vpop.permute.xlu1 %345 }
 0x418   :  { %3195 = vmatmul.mubr.msk.f32.vlgmr.msra.gmra.mxu1 %vm119_vm3, %v346_v56 }
 0x419   :  { %3203 = vmatpush3.msk.msra.mxu1 %vm123_vm1, %v3807_v8  ;;  %3204 = vmatprep.mubr.msk.f32.mxu1 %vm3723_vm2, %v3722_v7 }
 0x41a   :  { %3212 = vmatprep.subr.mxu1 %v3722_v7 }
 0x41b   :  { %v494_v57 = vpop.permute.xlu1 %493 }
 0x41c   :  { %3205 = vmatmul.mubr.msk.f32.vlgmr.msra.gmra.mxu1 %vm119_vm3, %v494_v57 }
 0x41d   :  { %3213 = vmatpush3.msk.msra.mxu1 %vm123_vm1, %v3807_v8  ;;  %3214 = vmatprep.mubr.msk.f32.mxu1 %vm3723_vm2, %v3722_v7 }
 0x41e   :  { %3228 = vmatprep.subr.mxu1 %v3722_v7 }
 0x420   :  { %3215 = vmatmul.mubr.msk.f32.vlgmr.msra.gmra.mxu1 %vm119_vm3, %v642_v58 }
 0x421   :  { %3229 = vmatpush3.msra.mxu1 %v3854_v20  ;;  %3236 = vmatprep.mubr.msk.f32.mxu1 %vm3723_vm2, %v3722_v7 }
 0x422   :  { %3230 = vmatprep.subr.mxu1 %v3722_v7 }
 0x423   :  { %3231 = vmatpush3.msra.mxu1 %v3860_v22 }
 0x424   :  { %3232 = vmatprep.subr.mxu1 %v3722_v7 }
 0x425   :  { %3233 = vmatpush3.msra.mxu1 %v3869_v23 }
 0x426   :  { %3234 = vmatprep.subr.mxu1 %v3722_v7 }
 0x427   :  { %3235 = vmatpush3.msra.mxu1 %v3876_v24 }
 0x428   :  { %3250 = vmatprep.subr.mxu1 %v3722_v7 }
 0x484   :  { %v815_v60 = vpop.permute.xlu1 %814 }
 0x485   :  { %3237 = vmatmul.mubr.msk.f32.vlgmr.msra.gmra.mxu1 %vm715_vm4, %v815_v60 }
 0x486   :  { %3251 = vmatpush3.msra.mxu1 %v3963_v59  ;;  %3258 = vmatprep.mubr.msk.f32.mxu1 %vm3723_vm2, %v3722_v7 }
 0x487   :  { %3252 = vmatprep.subr.mxu1 %v3722_v7 }
 0x488   :  { %3253 = vmatpush3.msra.mxu1 %v3966_v61 }
 0x489   :  { %3254 = vmatprep.subr.mxu1 %v3722_v7 }
 0x48a   :  { %3255 = vmatpush3.msra.mxu1 %v3972_v62 }
 0x48b   :  { %3256 = vmatprep.subr.mxu1 %v3722_v7 }
 0x48c   :  { %3257 = vmatpush3.msra.mxu1 %v3976_v63 }
 0x48d   :  { %3259 = vmatmul.mubr.msk.f32.vlgmr.msra.gmra.mxu1 %vm715_vm4, %v815_v60  ;;  %3272 = vmatprep.subr.mxu1 %v3722_v7 }
 0x48e   :  { %3273 = vmatpush3.msra.mxu1 %v3905_v49  ;;  %3280 = vmatprep.mubr.msk.f32.mxu1 %vm3723_vm2, %v3722_v7 }
 0x48f   :  { %3274 = vmatprep.subr.mxu1 %v3722_v7 }
 0x490   :  { %3275 = vmatpush3.msra.mxu1 %v3910_v50 }
 0x491   :  { %3276 = vmatprep.subr.mxu1 %v3722_v7 }
 0x492   :  { %3277 = vmatpush3.msra.mxu1 %v3914_v51 }
 0x493   :  { %3278 = vmatprep.subr.mxu1 %v3722_v7 }
 0x494   :  { %3279 = vmatpush3.msra.mxu1 %v3918_v52 }
 0x495   :  { %3294 = vmatprep.subr.mxu1 %v3722_v7 }
 0x4d4   :  { %v267_v2 = vpop.f32.mrf.mxu1 }
 0x4d5   :  { %v268_v11 = vadd.f32 %v3894_v33, %v267_v2 }
 0x4d6   :  { %v3186_v3 = vpop.f32.mrf.mxu1 }
 0x4d8   :  { %v3993_v4 = vpop.f32.mrf.mxu1 }
 0x4da   :  { %v3196_v5 = vpop.f32.mrf.mxu1 }
 0x4dc   :  { %v3995_v6 = vpop.f32.mrf.mxu1 }
 0x4de   :  { %v3206_v8 = vpop.f32.mrf.mxu1 }
 0x4e0   :  { %v3997_v9 = vpop.f32.mrf.mxu1 }
 0x4e2   :  { %v3216_v10 = vpop.f32.mrf.mxu1 }
 0x545   :  { %v884_v12 = vpop.f32.mrf.mxu1 }
 0x546   :  { %v885_v13 = vadd.f32 %v884_v12, %v268_v11 }
 0x547   :  { %v3238_v14 = vpop.f32.mrf.mxu1 }
 0x548   :  { %3518 = vtanh.f32 %v885_v13  ;;  %v2997_v26 = vmul.f32 -1.442695, %v885_v13 }
 0x54d   :  { %v1048_v16 = vpop.f32.mrf.mxu1 }
 0x54e   :  { %v1049_v17 = vadd.f32 %v1048_v16, %v978_v0  ;;  %v342_v0 = vadd.f32 %v3894_v33, %v3885_v27 }
 0x54f   :  { %v3260_v18 = vpop.f32.mrf.mxu1 }
 0x550   :  { %v1058_v19 = vadd.f32 %v4003_v15, %v1049_v17 }
 0x552   :  { %3520 = vtanh.f32 %v1058_v19  ;;  %v3000_v28 = vmul.f32 -1.442695, %v1058_v19 }
 0x553   :  { %3522 = vpow2.f32 %v2997_v26 }
 0x554   :  { %3524 = vpow2.f32 %v3000_v28 }
 0x555   :  { %v3519_v21 = vpop.eup %3518 }
 0x556   :  { %897 = vrot.lane.b32.xlu0 %v3519_v21, %s3728_s26 }
 0x55f   :  { %v3521_v25 = vpop.eup %3520 }
 0x560   :  { %1068 = vrot.lane.b32.xlu1 %v3521_v25, %s3728_s26  ;;  %v3523_v30 = vpop.eup %3522 }
 0x561   :  { %v891_v32 = vadd.f32 1.0, %v3523_v30  ;;  %v3525_v34 = vpop.eup %3524 }
 0x562   :  { %v1062_v35 = vadd.f32 1.0, %v3525_v34 }
 0x563   :  { %3526 = vrcp.f32 %v891_v32 }
 0x564   :  { %3528 = vrcp.f32 %v1062_v35 }
 0x570   :  { %v3527_v36 = vpop.eup %3526 }
 0x571   :  { %v3529_v39 = vpop.eup %3528  ;;  %v895_v42 = vmul.f32 %v3527_v36, %v3899_v47 }
 0x572   :  { %v1066_v45 = vmul.f32 0.0, %v3529_v39 }
 0x5c8   :  { %v898_v37 = vpop.permute.xlu0 %897 }
 0x5c9   :  { %v900_v38 = vmul.f32 %v3527_v36, %v898_v37 }
 0x5cb   :  { %902 = vrot.lane.b32.xlu0 %v900_v38, %s3729_s27 }
 0x5d2   :  { %v1069_v40 = vpop.permute.xlu1 %1068 }
 0x5d3   :  { %v1071_v41 = vmul.f32 %v3529_v39, %v1069_v40 }
 0x5d5   :  { %1073 = vrot.lane.b32.xlu1 %v1071_v41, %s3729_s27 }
 0x63d   :  { %v903_v43 = vpop.permute.xlu0 %902 }
 0x63e   :  { %v4011_v44 = vadd.f32 %v903_v43, %v895_v42 }
 0x640   :  { %3530 = vtanh.f32 %v4011_v44 }
 0x647   :  { %v1074_v46 = vpop.permute.xlu1 %1073 }
 0x648   :  { %v4014_v48 = vadd.f32 %v1074_v46, %v1066_v45 }
 0x64a   :  { %3532 = vtanh.f32 %v4014_v48 }
 0x64d   :  { %v3531_v53 = vpop.eup %3530 }
 0x64e   :  { %908 = vrot.lane.b32.xlu0 %v3531_v53, %s3728_s26 }
 0x657   :  { %v3533_v54 = vpop.eup %3532 }
 0x658   :  { %1079 = vrot.lane.b32.xlu1 %v3533_v54, %s3728_s26 }
 0x6c0   :  { %v909_v55 = vpop.permute.xlu0 %908 }
 0x6c1   :  { %v911_v56 = vmul.f32 %v3527_v36, %v909_v55  ;;  %v416_v55 = vadd.f32 %v3894_v33, %v3993_v4 }
 0x6c3   :  { %1084 = vrot.lane.b32.xlu0 %v911_v56, %s3729_s27 }
 0x6ca   :  { %v1080_v47 = vpop.permute.xlu1 %1079 }
 0x6cb   :  { %v1082_v57 = vmul.f32 %v3529_v39, %v1080_v47 }
 0x6cd   :  { %1183 = vrot.lane.b32.xlu1 %v1082_v57, %s3729_s27 }
 0x735   :  { %v1085_v58 = vpop.permute.xlu0 %1084 }
 0x736   :  { %3270 = vmatmul.mubr.msk.f32.vlgmr.msra.gmra.mxu0 %vm715_vm4, %v1085_v58 }
 0x737   :  { %3284 = vmatpush3.msra.mxu0 %v3963_v59  ;;  %3291 = vmatprep.mubr.msk.f32.mxu0 %vm3723_vm2, %v3722_v7 }
 0x738   :  { %3285 = vmatprep.subr.mxu0 %v3722_v7 }
 0x739   :  { %3286 = vmatpush3.msra.mxu0 %v3966_v61 }
 0x73a   :  { %3287 = vmatprep.subr.mxu0 %v3722_v7 }
 0x73b   :  { %3288 = vmatpush3.msra.mxu0 %v3972_v62 }
 0x73c   :  { %3289 = vmatprep.subr.mxu0 %v3722_v7 }
 0x73d   :  { %3290 = vmatpush3.msra.mxu0 %v3976_v63 }
 0x73e   :  { %3292 = vmatmul.mubr.msk.f32.vlgmr.msra.gmra.mxu0 %vm715_vm4, %v1085_v58  ;;  %3305 = vmatprep.subr.mxu0 %v3722_v7 }
 0x73f   :  { %v1184_v60 = vpop.permute.xlu1 %1183  ;;  %3306 = vmatpush3.msra.mxu0 %v3905_v49  ;;  %3313 = vmatprep.mubr.msk.f32.mxu0 %vm3723_vm2, %v3722_v7 }
 0x740   :  { %3281 = vmatmul.mubr.msk.f32.vlgmr.msra.gmra.mxu1 %vm715_vm4, %v1184_v60  ;;  %3307 = vmatprep.subr.mxu0 %v3722_v7 }
 0x741   :  { %3295 = vmatpush3.msra.mxu1 %v3854_v20  ;;  %3302 = vmatprep.mubr.msk.f32.mxu1 %vm3723_vm2, %v3722_v7 }
 0x742   :  { %3296 = vmatprep.subr.mxu1 %v3722_v7  ;;  %3308 = vmatpush3.msra.mxu0 %v3910_v50 }
 0x743   :  { %3297 = vmatpush3.msra.mxu1 %v3860_v22  ;;  %3309 = vmatprep.subr.mxu0 %v3722_v7 }
 0x744   :  { %3298 = vmatprep.subr.mxu1 %v3722_v7  ;;  %3310 = vmatpush3.msra.mxu0 %v3914_v51 }
 0x745   :  { %3299 = vmatpush3.msra.mxu1 %v3869_v23  ;;  %3311 = vmatprep.subr.mxu0 %v3722_v7 }
 0x746   :  { %3300 = vmatprep.subr.mxu1 %v3722_v7  ;;  %3312 = vmatpush3.msra.mxu0 %v3918_v52 }
 0x747   :  { %3301 = vmatpush3.msra.mxu1 %v3876_v24  ;;  %3327 = vmatprep.subr.mxu0 %v3722_v7 }
 0x748   :  { %3316 = vmatprep.subr.mxu1 %v3722_v7 }
 0x7f6   :  { %v1154_v1 = vpop.f32.mrf.mxu0 }
 0x7f7   :  { %v1155_v2 = vadd.f32 %v1154_v1, %v342_v0 }
 0x7f8   :  { %v3271_v3 = vpop.f32.mrf.mxu0 }
 0x7f9   :  { %3534 = vtanh.f32 %v1155_v2  ;;  %v3002_v17 = vmul.f32 -1.442695, %v1155_v2 }
 0x7fe   :  { %v1323_v5 = vpop.f32.mrf.mxu0 }
 0x800   :  { %v1253_v8 = vpop.f32.mrf.mxu1  ;;  %v3293_v10 = vpop.f32.mrf.mxu0 }
 0x801   :  { %v1324_v11 = vadd.f32 %v1323_v5, %v1253_v8 }
 0x802   :  { %v3282_v12 = vpop.f32.mrf.mxu1 }
 0x803   :  { %v1327_v13 = vadd.f32 %v4003_v15, %v1324_v11 }
 0x805   :  { %3536 = vtanh.f32 %v1327_v13  ;;  %v3005_v27 = vmul.f32 -1.442695, %v1327_v13 }
 0x806   :  { %v3535_v14 = vpop.eup %3534  ;;  %3538 = vpow2.f32 %v3002_v17 }
 0x807   :  { %1167 = vrot.lane.b32.xlu0 %v3535_v14, %s3728_s26  ;;  %3540 = vpow2.f32 %v3005_v27 }
 0x812   :  { %v3537_v16 = vpop.eup %3536 }
 0x813   :  { %1337 = vrot.lane.b32.xlu1 %v3537_v16, %s3728_s26  ;;  %v3539_v18 = vpop.eup %3538 }
 0x814   :  { %v1161_v19 = vadd.f32 1.0, %v3539_v18  ;;  %v3541_v21 = vpop.eup %3540 }
 0x815   :  { %v1331_v25 = vadd.f32 1.0, %v3541_v21 }
 0x816   :  { %3542 = vrcp.f32 %v1161_v19 }
 0x817   :  { %3544 = vrcp.f32 %v1331_v25 }
 0x823   :  { %v3543_v26 = vpop.eup %3542 }
 0x824   :  { %v3545_v32 = vpop.eup %3544  ;;  %v1165_v36 = vmul.f32 %v3543_v26, %v4011_v44 }
 0x825   :  { %v1335_v39 = vmul.f32 %v3545_v32, %v4014_v48 }
 0x879   :  { %v1168_v28 = vpop.permute.xlu0 %1167 }
 0x87a   :  { %v1170_v30 = vmul.f32 %v3543_v26, %v1168_v28 }
 0x87c   :  { %1172 = vrot.lane.b32.xlu0 %v1170_v30, %s3729_s27 }
 0x885   :  { %v1338_v34 = vpop.permute.xlu1 %1337 }
 0x886   :  { %v1340_v35 = vmul.f32 %v3545_v32, %v1338_v34 }
 0x888   :  { %1342 = vrot.lane.b32.xlu1 %v1340_v35, %s3729_s27 }
 0x8ee   :  { %v1173_v37 = vpop.permute.xlu0 %1172 }
 0x8ef   :  { %v4062_v38 = vadd.f32 %v1173_v37, %v1165_v36 }
 0x8f1   :  { %3546 = vtanh.f32 %v4062_v38 }
 0x8fa   :  { %v1343_v40 = vpop.permute.xlu1 %1342 }
 0x8fb   :  { %v4066_v41 = vadd.f32 %v1343_v40, %v1335_v39 }
 0x8fd   :  { %3548 = vtanh.f32 %v4066_v41 }
 0x8fe   :  { %v3547_v42 = vpop.eup %3546 }
 0x8ff   :  { %1178 = vrot.lane.b32.xlu0 %v3547_v42, %s3728_s26 }
 0x90a   :  { %v3549_v43 = vpop.eup %3548 }
 0x90b   :  { %1348 = vrot.lane.b32.xlu1 %v3549_v43, %s3728_s26  ;;  %v490_v43 = vadd.f32 %v3894_v33, %v3887_v29 }
 0x971   :  { %v1179_v45 = vpop.permute.xlu0 %1178 }
 0x972   :  { %v1181_v44 = vmul.f32 %v3543_v26, %v1179_v45 }
 0x974   :  { %1353 = vrot.lane.b32.xlu0 %v1181_v44, %s3729_s27 }
 0x97d   :  { %v1349_v46 = vpop.permute.xlu1 %1348 }
 0x97e   :  { %v1351_v53 = vmul.f32 %v3545_v32, %v1349_v46 }
 0x980   :  { %1452 = vrot.lane.b32.xlu1 %v1351_v53, %s3729_s27 }
 0x9e6   :  { %v1354_v48 = vpop.permute.xlu0 %1353 }
 0x9e7   :  { %3303 = vmatmul.mubr.msk.f32.vlgmr.msra.gmra.mxu1 %vm715_vm4, %v1354_v48 }
 0x9e8   :  { %3317 = vmatpush3.msra.mxu1 %v3963_v59  ;;  %3324 = vmatprep.mubr.msk.f32.mxu1 %vm3723_vm2, %v3722_v7 }
 0x9e9   :  { %3318 = vmatprep.subr.mxu1 %v3722_v7 }
 0x9ea   :  { %3319 = vmatpush3.msra.mxu1 %v3966_v61 }
 0x9eb   :  { %3320 = vmatprep.subr.mxu1 %v3722_v7 }
 0x9ec   :  { %3321 = vmatpush3.msra.mxu1 %v3972_v62 }
 0x9ed   :  { %3322 = vmatprep.subr.mxu1 %v3722_v7 }
 0x9ee   :  { %3323 = vmatpush3.msra.mxu1 %v3976_v63 }
 0x9ef   :  { %3325 = vmatmul.mubr.msk.f32.vlgmr.msra.gmra.mxu1 %vm715_vm4, %v1354_v48  ;;  %3338 = vmatprep.subr.mxu1 %v3722_v7 }
 0x9f0   :  { %3339 = vmatpush3.msra.mxu1 %v3905_v49  ;;  %3346 = vmatprep.mubr.msk.f32.mxu1 %vm3723_vm2, %v3722_v7 }
 0x9f1   :  { %3340 = vmatprep.subr.mxu1 %v3722_v7 }
 0x9f2   :  { %v1453_v54 = vpop.permute.xlu1 %1452  ;;  %3341 = vmatpush3.msra.mxu1 %v3910_v50 }
 0x9f3   :  { %3314 = vmatmul.mubr.msk.f32.vlgmr.msra.gmra.mxu0 %vm715_vm4, %v1453_v54  ;;  %3342 = vmatprep.subr.mxu1 %v3722_v7 }
 0x9f4   :  { %3328 = vmatpush3.msra.mxu0 %v3854_v20  ;;  %3335 = vmatprep.mubr.msk.f32.mxu0 %vm3723_vm2, %v3722_v7 }
 0x9f5   :  { %3329 = vmatprep.subr.mxu0 %v3722_v7  ;;  %3343 = vmatpush3.msra.mxu1 %v3914_v51 }
 0x9f6   :  { %3330 = vmatpush3.msra.mxu0 %v3860_v22  ;;  %3344 = vmatprep.subr.mxu1 %v3722_v7 }
 0x9f7   :  { %3331 = vmatprep.subr.mxu0 %v3722_v7  ;;  %3345 = vmatpush3.msra.mxu1 %v3918_v52 }
 0x9f8   :  { %3332 = vmatpush3.msra.mxu0 %v3869_v23  ;;  %3360 = vmatprep.subr.mxu1 %v3722_v7 }
 0x9f9   :  { %3333 = vmatprep.subr.mxu0 %v3722_v7 }
 0x9fa   :  { %3334 = vmatpush3.msra.mxu0 %v3876_v24 }
 0x9fb   :  { %3349 = vmatprep.subr.mxu0 %v3722_v7 }
 0xaa7   :  { %v1423_v56 = vpop.f32.mrf.mxu1 }
 0xaa8   :  { %v1424_v47 = vadd.f32 %v1423_v56, %v416_v55 }
 0xaa9   :  { %v3304_v57 = vpop.f32.mrf.mxu1 }
 0xaaa   :  { %3550 = vtanh.f32 %v1424_v47  ;;  %v3007_v10 = vmul.f32 -1.442695, %v1424_v47 }
 0xaaf   :  { %v1592_v58 = vpop.f32.mrf.mxu1 }
 0xab1   :  { %v3326_v60 = vpop.f32.mrf.mxu1 }
 0xab3   :  { %v1522_v0 = vpop.f32.mrf.mxu0 }
 0xab4   :  { %v1593_v1 = vadd.f32 %v1592_v58, %v1522_v0 }
 0xab5   :  { %v3315_v2 = vpop.f32.mrf.mxu0 }
 0xab6   :  { %v1596_v3 = vadd.f32 %v4003_v15, %v1593_v1 }
 0xab7   :  { %v3551_v5 = vpop.eup %3550 }
 0xab8   :  { %3552 = vtanh.f32 %v1596_v3  ;;  %1436 = vrot.lane.b32.xlu0 %v3551_v5, %s3728_s26  ;;  %v3010_v4 = vmul.f32 -1.442695, %v1596_v3 }
 0xab9   :  { %3554 = vpow2.f32 %v3007_v10 }
 0xaba   :  { %3556 = vpow2.f32 %v3010_v4 }
 0xac5   :  { %v3553_v8 = vpop.eup %3552 }
 0xac6   :  { %1606 = vrot.lane.b32.xlu1 %v3553_v8, %s3728_s26  ;;  %v3555_v11 = vpop.eup %3554 }
 0xac7   :  { %v1430_v12 = vadd.f32 1.0, %v3555_v11  ;;  %v3557_v13 = vpop.eup %3556 }
 0xac8   :  { %v1600_v14 = vadd.f32 1.0, %v3557_v13 }
 0xac9   :  { %3558 = vrcp.f32 %v1430_v12 }
 0xaca   :  { %3560 = vrcp.f32 %v1600_v14 }
 0xad6   :  { %v3559_v16 = vpop.eup %3558 }
 0xad7   :  { %v3561_v18 = vpop.eup %3560  ;;  %v1434_v25 = vmul.f32 %v3559_v16, %v4062_v38 }
 0xad8   :  { %v1604_v30 = vmul.f32 %v3561_v18, %v4066_v41 }
 0xb2a   :  { %v1437_v17 = vpop.permute.xlu0 %1436 }
 0xb2b   :  { %v1439_v27 = vmul.f32 %v3559_v16, %v1437_v17 }
 0xb2d   :  { %1441 = vrot.lane.b32.xlu0 %v1439_v27, %s3729_s27 }
 0xb38   :  { %v1607_v19 = vpop.permute.xlu1 %1606 }
 0xb39   :  { %v1609_v21 = vmul.f32 %v3561_v18, %v1607_v19 }
 0xb3b   :  { %1611 = vrot.lane.b32.xlu1 %v1609_v21, %s3729_s27 }
 0xb9f   :  { %v1442_v26 = vpop.permute.xlu0 %1441 }
 0xba0   :  { %v4114_v28 = vadd.f32 %v1442_v26, %v1434_v25 }
 0xba2   :  { %3562 = vtanh.f32 %v4114_v28 }
 0xbad   :  { %v1612_v32 = vpop.permute.xlu1 %1611 }
 0xbae   :  { %v4118_v34 = vadd.f32 %v1612_v32, %v1604_v30 }
 0xbaf   :  { %v3563_v35 = vpop.eup %3562 }
 0xbb0   :  { %3564 = vtanh.f32 %v4118_v34  ;;  %1447 = vrot.lane.b32.xlu0 %v3563_v35, %s3728_s26 }
 0xbbd   :  { %v3565_v36 = vpop.eup %3564 }
 0xbbe   :  { %1617 = vrot.lane.b32.xlu1 %v3565_v36, %s3728_s26 }
 0xc22   :  { %v1448_v37 = vpop.permute.xlu0 %1447 }
 0xc23   :  { %v1450_v38 = vmul.f32 %v3559_v16, %v1448_v37 }
 0xc25   :  { %1622 = vrot.lane.b32.xlu0 %v1450_v38, %s3729_s27 }
 0xc30   :  { %v1618_v39 = vpop.permute.xlu1 %1617 }
 0xc31   :  { %v1620_v40 = vmul.f32 %v3561_v18, %v1618_v39 }
 0xc33   :  { %1721 = vrot.lane.b32.xlu1 %v1620_v40, %s3729_s27 }
 0xc97   :  { %v1623_v41 = vpop.permute.xlu0 %1622 }
 0xc98   :  { %3336 = vmatmul.mubr.msk.f32.vlgmr.msra.gmra.mxu0 %vm715_vm4, %v1623_v41 }
 0xc99   :  { %3350 = vmatpush3.msra.mxu0 %v3963_v59  ;;  %3357 = vmatprep.mubr.msk.f32.mxu0 %vm3723_vm2, %v3722_v7 }
 0xc9a   :  { %3351 = vmatprep.subr.mxu0 %v3722_v7 }
 0xc9b   :  { %3352 = vmatpush3.msra.mxu0 %v3966_v61 }
 0xc9c   :  { %3353 = vmatprep.subr.mxu0 %v3722_v7 }
 0xc9d   :  { %3354 = vmatpush3.msra.mxu0 %v3972_v62 }
 0xc9e   :  { %3355 = vmatprep.subr.mxu0 %v3722_v7 }
 0xc9f   :  { %3356 = vmatpush3.msra.mxu0 %v3976_v63 }
 0xca0   :  { %3358 = vmatmul.mubr.msk.f32.vlgmr.msra.gmra.mxu0 %vm715_vm4, %v1623_v41  ;;  %3371 = vmatprep.subr.mxu0 %v3722_v7 }
 0xca1   :  { %3372 = vmatpush3.msra.mxu0 %v3905_v49  ;;  %3379 = vmatprep.mubr.msk.f32.mxu0 %vm3723_vm2, %v3722_v7 }
 0xca2   :  { %3373 = vmatprep.subr.mxu0 %v3722_v7 }
 0xca3   :  { %3374 = vmatpush3.msra.mxu0 %v3910_v50 }
 0xca4   :  { %3375 = vmatprep.subr.mxu0 %v3722_v7 }
 0xca5   :  { %v1722_v42 = vpop.permute.xlu1 %1721  ;;  %3376 = vmatpush3.msra.mxu0 %v3914_v51 }
 0xca6   :  { %3347 = vmatmul.mubr.msk.f32.vlgmr.msra.gmra.mxu1 %vm715_vm4, %v1722_v42  ;;  %3377 = vmatprep.subr.mxu0 %v3722_v7 }
 0xca7   :  { %3361 = vmatpush3.msra.mxu1 %v3854_v20  ;;  %3368 = vmatprep.mubr.msk.f32.mxu1 %vm3723_vm2, %v3722_v7 }
 0xca8   :  { %3362 = vmatprep.subr.mxu1 %v3722_v7  ;;  %3378 = vmatpush3.msra.mxu0 %v3918_v52 }
 0xca9   :  { %3363 = vmatpush3.msra.mxu1 %v3860_v22  ;;  %3393 = vmatprep.subr.mxu0 %v3722_v7 }
 0xcaa   :  { %3364 = vmatprep.subr.mxu1 %v3722_v7 }
 0xcab   :  { %3365 = vmatpush3.msra.mxu1 %v3869_v23 }
 0xcac   :  { %3366 = vmatprep.subr.mxu1 %v3722_v7 }
 0xcad   :  { %3367 = vmatpush3.msra.mxu1 %v3876_v24 }
 0xcae   :  { %3382 = vmatprep.subr.mxu1 %v3722_v7 }
 0xd58   :  { %v1692_v45 = vpop.f32.mrf.mxu0 }
 0xd59   :  { %v1693_v44 = vadd.f32 %v1692_v45, %v490_v43 }
 0xd5a   :  { %v3337_v46 = vpop.f32.mrf.mxu0 }
 0xd5b   :  { %3566 = vtanh.f32 %v1693_v44  ;;  %v3012_v60 = vmul.f32 -1.442695, %v1693_v44 }
 0xd60   :  { %v1861_v53 = vpop.f32.mrf.mxu0 }
 0xd62   :  { %v3359_v48 = vpop.f32.mrf.mxu0 }
 0xd66   :  { %v1791_v54 = vpop.f32.mrf.mxu1 }
 0xd67   :  { %v1862_v55 = vadd.f32 %v1861_v53, %v1791_v54 }
 0xd68   :  { %v3567_v56 = vpop.eup %3566  ;;  %v3348_v47 = vpop.f32.mrf.mxu1 }
 0xd69   :  { %v1865_v57 = vadd.f32 %v4003_v15, %v1862_v55  ;;  %1705 = vrot.lane.b32.xlu0 %v3567_v56, %s3728_s26 }
 0xd6b   :  { %3568 = vtanh.f32 %v1865_v57  ;;  %v3015_v29 = vmul.f32 -1.442695, %v1865_v57 }
 0xd6c   :  { %3570 = vpow2.f32 %v3012_v60 }
 0xd6d   :  { %3572 = vpow2.f32 %v3015_v29 }
 0xd78   :  { %v3569_v58 = vpop.eup %3568 }
 0xd79   :  { %1875 = vrot.lane.b32.xlu1 %v3569_v58, %s3728_s26  ;;  %v3571_v0 = vpop.eup %3570 }
 0xd7a   :  { %v1699_v1 = vadd.f32 1.0, %v3571_v0  ;;  %v3573_v2 = vpop.eup %3572 }
 0xd7b   :  { %v1869_v3 = vadd.f32 1.0, %v3573_v2 }
 0xd7c   :  { %3574 = vrcp.f32 %v1699_v1 }
 0xd7d   :  { %3576 = vrcp.f32 %v1869_v3 }
 0xd89   :  { %v3575_v5 = vpop.eup %3574 }
 0xd8a   :  { %v3577_v4 = vpop.eup %3576  ;;  %v1703_v13 = vmul.f32 %v3575_v5, %v4114_v28 }
 0xd8b   :  { %v1873_v17 = vmul.f32 %v3577_v4, %v4118_v34 }
 0xddb   :  { %v1706_v8 = vpop.permute.xlu0 %1705 }
 0xddc   :  { %v1708_v10 = vmul.f32 %v3575_v5, %v1706_v8 }
 0xdde   :  { %1710 = vrot.lane.b32.xlu0 %v1708_v10, %s3729_s27 }
 0xdeb   :  { %v1876_v11 = vpop.permute.xlu1 %1875 }
 0xdec   :  { %v1878_v12 = vmul.f32 %v3577_v4, %v1876_v11 }
 0xdee   :  { %1880 = vrot.lane.b32.xlu1 %v1878_v12, %s3729_s27 }
 0xe50   :  { %v1711_v14 = vpop.permute.xlu0 %1710 }
 0xe51   :  { %v4166_v16 = vadd.f32 %v1711_v14, %v1703_v13  ;;  %v4273_v13 = vld [vmem:[%s4369_s5] ss:$0 sm:$0xff] }
 0xe52   :  { %v638_v14 = vadd.f32 %v4273_v13, %v3889_v31 }
 0xe53   :  { %3578 = vtanh.f32 %v4166_v16 }
 0xe60   :  { %v3579_v27 = vpop.eup %3578  ;;  %v1881_v18 = vpop.permute.xlu1 %1880 }
 0xe61   :  { %v4170_v19 = vadd.f32 %v1881_v18, %v1873_v17  ;;  %1716 = vrot.lane.b32.xlu0 %v3579_v27, %s3728_s26 }
 0xe63   :  { %3580 = vtanh.f32 %v4170_v19 }
 0xe70   :  { %v3581_v21 = vpop.eup %3580 }
 0xe71   :  { %1886 = vrot.lane.b32.xlu1 %v3581_v21, %s3728_s26 }
 0xed3   :  { %v1717_v25 = vpop.permute.xlu0 %1716 }
 0xed4   :  { %v1719_v26 = vmul.f32 %v3575_v5, %v1717_v25 }
 0xed6   :  { %1891 = vrot.lane.b32.xlu0 %v1719_v26, %s3729_s27 }
 0xee3   :  { %v1887_v28 = vpop.permute.xlu1 %1886 }
 0xee4   :  { %v1889_v30 = vmul.f32 %v3577_v4, %v1887_v28 }
 0xee6   :  { %1990 = vrot.lane.b32.xlu1 %v1889_v30, %s3729_s27 }
 0xf48   :  { %v1892_v32 = vpop.permute.xlu0 %1891 }
 0xf49   :  { %3369 = vmatmul.mubr.msk.f32.vlgmr.msra.gmra.mxu1 %vm715_vm4, %v1892_v32 }
 0xf4a   :  { %3383 = vmatpush3.msra.mxu1 %v3963_v59  ;;  %3390 = vmatprep.mubr.msk.f32.mxu1 %vm3723_vm2, %v3722_v7 }
 0xf4b   :  { %3384 = vmatprep.subr.mxu1 %v3722_v7 }
 0xf4c   :  { %3385 = vmatpush3.msra.mxu1 %v3966_v61 }
 0xf4d   :  { %3386 = vmatprep.subr.mxu1 %v3722_v7 }
 0xf4e   :  { %3387 = vmatpush3.msra.mxu1 %v3972_v62 }
 0xf4f   :  { %3388 = vmatprep.subr.mxu1 %v3722_v7 }
 0xf50   :  { %3389 = vmatpush3.msra.mxu1 %v3976_v63 }
 0xf51   :  { %3391 = vmatmul.mubr.msk.f32.vlgmr.msra.gmra.mxu1 %vm715_vm4, %v1892_v32  ;;  %3404 = vmatprep.subr.mxu1 %v3722_v7 }
 0xf52   :  { %3405 = vmatpush3.msra.mxu1 %v3905_v49  ;;  %3412 = vmatprep.mubr.msk.f32.mxu1 %vm3723_vm2, %v3722_v7 }
 0xf53   :  { %3406 = vmatprep.subr.mxu1 %v3722_v7 }
 0xf54   :  { %3407 = vmatpush3.msra.mxu1 %v3910_v50 }
 0xf55   :  { %3408 = vmatprep.subr.mxu1 %v3722_v7 }
 0xf56   :  { %3409 = vmatpush3.msra.mxu1 %v3914_v51 }
 0xf57   :  { %3410 = vmatprep.subr.mxu1 %v3722_v7 }
 0xf58   :  { %v1991_v34 = vpop.permute.xlu1 %1990  ;;  %3411 = vmatpush3.msra.mxu1 %v3918_v52 }
 0xf59   :  { %3380 = vmatmul.mubr.msk.f32.vlgmr.msra.gmra.mxu0 %vm715_vm4, %v1991_v34  ;;  %3426 = vmatprep.subr.mxu1 %v3722_v7 }
 0xf5a   :  { %3394 = vmatpush3.msra.mxu0 %v3854_v20  ;;  %3401 = vmatprep.mubr.msk.f32.mxu0 %vm3723_vm2, %v3722_v7  ;;  %v564_v20 = vadd.f32 %v3894_v33, %v3995_v6 }
 0xf5b   :  { %3395 = vmatprep.subr.mxu0 %v3722_v7 }
 0xf5c   :  { %3396 = vmatpush3.msra.mxu0 %v3860_v22 }
 0xf5d   :  { %3397 = vmatprep.subr.mxu0 %v3722_v7 }
 0xf5e   :  { %3398 = vmatpush3.msra.mxu0 %v3869_v23 }
 0xf5f   :  { %3399 = vmatprep.subr.mxu0 %v3722_v7 }
 0xf60   :  { %3400 = vmatpush3.msra.mxu0 %v3876_v24 }
 0xf61   :  { %3415 = vmatprep.subr.mxu0 %v3722_v7 }
0x1009   :  { %v1961_v35 = vpop.f32.mrf.mxu1 }
0x100a   :  { %v1962_v36 = vadd.f32 %v1961_v35, %v564_v20 }
0x100b   :  { %v3370_v37 = vpop.f32.mrf.mxu1 }
0x100c   :  { %3582 = vtanh.f32 %v1962_v36  ;;  %v3017_v43 = vmul.f32 -1.442695, %v1962_v36 }
0x1011   :  { %v2130_v38 = vpop.f32.mrf.mxu1 }
0x1013   :  { %v3392_v39 = vpop.f32.mrf.mxu1 }
0x1019   :  { %v3583_v22 = vpop.eup %3582  ;;  %v2060_v40 = vpop.f32.mrf.mxu0 }
0x101a   :  { %v2131_v41 = vadd.f32 %v2130_v38, %v2060_v40  ;;  %1974 = vrot.lane.b32.xlu0 %v3583_v22, %s3728_s26 }
0x101b   :  { %v3381_v23 = vpop.f32.mrf.mxu0 }
0x101c   :  { %v2134_v42 = vadd.f32 %v4003_v15, %v2131_v41 }
0x101e   :  { %3584 = vtanh.f32 %v2134_v42  ;;  %v3020_v6 = vmul.f32 -1.442695, %v2134_v42 }
0x101f   :  { %3586 = vpow2.f32 %v3017_v43 }
0x1020   :  { %3588 = vpow2.f32 %v3020_v6 }
0x102b   :  { %v3585_v24 = vpop.eup %3584 }
0x102c   :  { %2144 = vrot.lane.b32.xlu1 %v3585_v24, %s3728_s26  ;;  %v3587_v33 = vpop.eup %3586 }
0x102d   :  { %v1968_v45 = vadd.f32 1.0, %v3587_v33  ;;  %v3589_v44 = vpop.eup %3588 }
0x102e   :  { %v2138_v54 = vadd.f32 1.0, %v3589_v44 }
0x102f   :  { %3590 = vrcp.f32 %v1968_v45 }
0x1030   :  { %3592 = vrcp.f32 %v2138_v54 }
0x103c   :  { %v3591_v46 = vpop.eup %3590 }
0x103d   :  { %v3593_v55 = vpop.eup %3592  ;;  %v1972_v57 = vmul.f32 %v3591_v46, %v4166_v16 }
0x103e   :  { %v2142_v0 = vmul.f32 %v3593_v55, %v4170_v19 }
0x108c   :  { %v1975_v53 = vpop.permute.xlu0 %1974 }
0x108d   :  { %v1977_v48 = vmul.f32 %v3591_v46, %v1975_v53 }
0x108f   :  { %1979 = vrot.lane.b32.xlu0 %v1977_v48, %s3729_s27 }
0x109e   :  { %v2145_v56 = vpop.permute.xlu1 %2144 }
0x109f   :  { %v2147_v47 = vmul.f32 %v3593_v55, %v2145_v56 }
0x10a1   :  { %2149 = vrot.lane.b32.xlu1 %v2147_v47, %s3729_s27 }
0x1101   :  { %v1980_v58 = vpop.permute.xlu0 %1979 }
0x1102   :  { %v4218_v60 = vadd.f32 %v1980_v58, %v1972_v57  ;;  %v3647_v57 = vld [vmem:[#allocation5 + $0x18] sm:$0xff]  ;;  %v3648_v58 = vld [vmem:[#allocation5 + $0x10] sm:$0xff] }
0x1104   :  { %3594 = vtanh.f32 %v4218_v60 }
0x1111   :  { %v3595_v29 = vpop.eup %3594 }
0x1112   :  { %1985 = vrot.lane.b32.xlu0 %v3595_v29, %s3728_s26  ;;  %v3650_v29 = vld [vmem:[#allocation5] sm:$0xff] }
0x1113   :  { %v2150_v1 = vpop.permute.xlu1 %2149 }
0x1114   :  { %v4223_v2 = vadd.f32 %v2150_v1, %v2142_v0  ;;  %v712_v0 = vadd.f32 %v4273_v13, %v3997_v9 }
0x1116   :  { %3596 = vtanh.f32 %v4223_v2 }
0x1123   :  { %v3597_v3 = vpop.eup %3596 }
0x1124   :  { %2155 = vrot.lane.b32.xlu1 %v3597_v3, %s3728_s26 }
0x1184   :  { %v1986_v5 = vpop.permute.xlu0 %1985 }
0x1185   :  { %v1988_v8 = vmul.f32 %v3591_v46, %v1986_v5 }
0x1187   :  { %2160 = vrot.lane.b32.xlu0 %v1988_v8, %s3729_s27 }
0x1196   :  { %v2156_v10 = vpop.permute.xlu1 %2155 }
0x1197   :  { %v2158_v4 = vmul.f32 %v3593_v55, %v2156_v10 }
0x1199   :  { %2259 = vrot.lane.b32.xlu1 %v2158_v4, %s3729_s27 }
0x11f9   :  { %v2161_v11 = vpop.permute.xlu0 %2160 }
0x11fa   :  { %3402 = vmatmul.mubr.msk.f32.vlgmr.msra.gmra.mxu0 %vm715_vm4, %v2161_v11 }
0x11fb   :  { %3416 = vmatpush3.msra.mxu0 %v3963_v59  ;;  %3423 = vmatprep.mubr.msk.f32.mxu0 %vm3723_vm2, %v3722_v7 }
0x11fc   :  { %3417 = vmatprep.subr.mxu0 %v3722_v7 }
0x11fd   :  { %3418 = vmatpush3.msra.mxu0 %v3966_v61 }
0x11fe   :  { %3419 = vmatprep.subr.mxu0 %v3722_v7 }
0x11ff   :  { %3420 = vmatpush3.msra.mxu0 %v3972_v62 }
0x1200   :  { %3421 = vmatprep.subr.mxu0 %v3722_v7 }
0x1201   :  { %3422 = vmatpush3.msra.mxu0 %v3976_v63 }
0x1202   :  { %3424 = vmatmul.mubr.msk.f32.vlgmr.msra.gmra.mxu0 %vm715_vm4, %v2161_v11  ;;  %3437 = vmatprep.subr.mxu0 %v3722_v7 }
0x1203   :  { %3438 = vmatpush3.msra.mxu0 %v3905_v49  ;;  %3445 = vmatprep.mubr.msk.f32.mxu0 %vm3723_vm2, %v3722_v7  ;;  %v3638_v49 = vld [vmem:[%s4368_s4 + $0x18] sm:$0xff] }
0x1204   :  { %3439 = vmatprep.subr.mxu0 %v3722_v7 }
0x1205   :  { %3440 = vmatpush3.msra.mxu0 %v3910_v50  ;;  %v3639_v50 = vld [vmem:[%s4368_s4 + $0x10] sm:$0xff] }
0x1206   :  { %3441 = vmatprep.subr.mxu0 %v3722_v7 }
0x1207   :  { %3442 = vmatpush3.msra.mxu0 %v3914_v51  ;;  %v3640_v51 = vld [vmem:[%s4368_s4 + $0x8] sm:$0xff] }
0x1208   :  { %3443 = vmatprep.subr.mxu0 %v3722_v7 }
0x1209   :  { %3444 = vmatpush3.msra.mxu0 %v3918_v52  ;;  %v3641_v52 = vld [vmem:[%s4368_s4] sm:$0xff] }
0x120a   :  { %3459 = vmatprep.subr.mxu0 %v3722_v7 }
0x120b   :  { %v2260_v12 = vpop.permute.xlu1 %2259 }
0x120c   :  { %3413 = vmatmul.mubr.msk.f32.vlgmr.msra.gmra.mxu1 %vm715_vm4, %v2260_v12 }
0x120d   :  { %3427 = vmatpush3.msra.mxu1 %v3638_v49  ;;  %3434 = vmatprep.mubr.msk.f32.mxu1 %vm3723_vm2, %v3722_v7 }
0x120e   :  { %3428 = vmatprep.subr.mxu1 %v3722_v7 }
0x120f   :  { %3429 = vmatpush3.msra.mxu1 %v3639_v50 }
0x1210   :  { %3430 = vmatprep.subr.mxu1 %v3722_v7 }
0x1211   :  { %3431 = vmatpush3.msra.mxu1 %v3640_v51 }
0x1212   :  { %3432 = vmatprep.subr.mxu1 %v3722_v7 }
0x1213   :  { %3433 = vmatpush3.msra.mxu1 %v3641_v52 }
0x1214   :  { %3448 = vmatprep.subr.mxu1 %v3722_v7 }
0x12ba   :  { %v2230_v16 = vpop.f32.mrf.mxu0 }
0x12bb   :  { %v2231_v17 = vadd.f32 %v2230_v16, %v638_v14 }
0x12bc   :  { %v3403_v27 = vpop.f32.mrf.mxu0 }
0x12bd   :  { %3598 = vtanh.f32 %v2231_v17  ;;  %v3022_v34 = vmul.f32 -1.442695, %v2231_v17 }
0x12c2   :  { %v2399_v18 = vpop.f32.mrf.mxu0 }
0x12c4   :  { %v3425_v19 = vpop.f32.mrf.mxu0 }
0x12ca   :  { %v3599_v21 = vpop.eup %3598 }
0x12cb   :  { %2243 = vrot.lane.b32.xlu0 %v3599_v21, %s3728_s26 }
0x12cc   :  { %v2329_v25 = vpop.f32.mrf.mxu1 }
0x12cd   :  { %v2400_v26 = vadd.f32 %v2399_v18, %v2329_v25 }
0x12ce   :  { %v3414_v28 = vpop.f32.mrf.mxu1 }
0x12cf   :  { %v2403_v30 = vadd.f32 %v4003_v15, %v2400_v26 }
0x12d1   :  { %3600 = vtanh.f32 %v2403_v30  ;;  %v3025_v35 = vmul.f32 -1.442695, %v2403_v30 }
0x12d2   :  { %3602 = vpow2.f32 %v3022_v34 }
0x12de   :  { %v3601_v32 = vpop.eup %3600 }
0x12df   :  { %2413 = vrot.lane.b32.xlu1 %v3601_v32, %s3728_s26  ;;  %v3603_v31 = vpop.eup %3602 }
0x12e0   :  { %v2237_v20 = vadd.f32 1.0, %v3603_v31 }
0x12e2   :  { %3604 = vrcp.f32 %v2237_v20 }
0x12e3   :  { %3606 = vpow2.f32 %v3025_v35 }
0x12ef   :  { %v3605_v36 = vpop.eup %3604 }
0x12f0   :  { %v3607_v38 = vpop.eup %3606  ;;  %v2241_v42 = vmul.f32 %v3605_v36, %v4218_v60  ;;  %v3649_v60 = vld [vmem:[#allocation5 + $0x8] sm:$0xff] }
0x12f1   :  { %v2407_v22 = vadd.f32 1.0, %v3607_v38 }
0x12f3   :  { %3608 = vrcp.f32 %v2407_v22 }
0x1300   :  { %v3609_v40 = vpop.eup %3608 }
0x1301   :  { %v2411_v6 = vmul.f32 %v3609_v40, %v4223_v2 }
0x133d   :  { %v2244_v37 = vpop.permute.xlu0 %2243 }
0x133e   :  { %v2246_v39 = vmul.f32 %v3605_v36, %v2244_v37 }
0x1340   :  { %2248 = vrot.lane.b32.xlu0 %v2246_v39, %s3729_s27 }
0x1351   :  { %v2414_v41 = vpop.permute.xlu1 %2413 }
0x1352   :  { %v2416_v23 = vmul.f32 %v3609_v40, %v2414_v41 }
0x1354   :  { %2418 = vrot.lane.b32.xlu1 %v2416_v23, %s3729_s27 }
0x13b2   :  { %v2249_v24 = vpop.permute.xlu0 %2248 }
0x13b3   :  { %v4283_v43 = vadd.f32 %v2249_v24, %v2241_v42 }
0x13b5   :  { %3610 = vtanh.f32 %v4283_v43 }
0x13c2   :  { %v3611_v33 = vpop.eup %3610 }
0x13c3   :  { %2254 = vrot.lane.b32.xlu0 %v3611_v33, %s3728_s26 }
0x13c6   :  { %v2419_v45 = vpop.permute.xlu1 %2418 }
0x13c7   :  { %v4288_v44 = vadd.f32 %v2419_v45, %v2411_v6 }
0x13c9   :  { %3612 = vtanh.f32 %v4288_v44 }
0x13d6   :  { %v3613_v46 = vpop.eup %3612 }
0x13d7   :  { %2424 = vrot.lane.b32.xlu1 %v3613_v46, %s3728_s26 }
0x1435   :  { %v2255_v53 = vpop.permute.xlu0 %2254 }
0x1436   :  { %v2257_v48 = vmul.f32 %v3605_v36, %v2255_v53 }
0x1438   :  { %2429 = vrot.lane.b32.xlu0 %v2257_v48, %s3729_s27 }
0x1449   :  { %v2425_v54 = vpop.permute.xlu1 %2424 }
0x144a   :  { %v2427_v55 = vmul.f32 %v3609_v40, %v2425_v54 }
0x144c   :  { %2528 = vrot.lane.b32.xlu1 %v2427_v55, %s3729_s27 }
0x14aa   :  { %v2430_v56 = vpop.permute.xlu0 %2429 }
0x14ab   :  { %3435 = vmatmul.mubr.msk.f32.vlgmr.msra.gmra.mxu1 %vm715_vm4, %v2430_v56 }
0x14ac   :  { %3449 = vmatpush3.msra.mxu1 %v3963_v59  ;;  %3456 = vmatprep.mubr.msk.f32.mxu1 %vm3723_vm2, %v3722_v7  ;;  %v3643_v59 = vld [vmem:[#allocation2 + $0x18] sm:$0xff] }
0x14ad   :  { %3450 = vmatprep.subr.mxu1 %v3722_v7 }
0x14ae   :  { %3451 = vmatpush3.msra.mxu1 %v3966_v61  ;;  %v3644_v61 = vld [vmem:[#allocation2 + $0x10] sm:$0xff] }
0x14af   :  { %3452 = vmatprep.subr.mxu1 %v3722_v7 }
0x14b0   :  { %3453 = vmatpush3.msra.mxu1 %v3972_v62  ;;  %v3645_v62 = vld [vmem:[#allocation2 + $0x8] sm:$0xff] }
0x14b1   :  { %3454 = vmatprep.subr.mxu1 %v3722_v7 }
0x14b2   :  { %3455 = vmatpush3.msra.mxu1 %v3976_v63  ;;  %v3646_v63 = vld [vmem:[#allocation2] sm:$0xff] }
0x14b3   :  { %3457 = vmatmul.mubr.msk.f32.vlgmr.msra.gmra.mxu1 %vm715_vm4, %v2430_v56  ;;  %3470 = vmatprep.subr.mxu1 %v3722_v7 }
0x14b4   :  { %3471 = vmatpush3.msra.mxu1 %v3643_v59  ;;  %3478 = vmatprep.mubr.msk.f32.mxu1 %vm3723_vm2, %v3722_v7 }
0x14b5   :  { %3472 = vmatprep.subr.mxu1 %v3722_v7 }
0x14b6   :  { %3473 = vmatpush3.msra.mxu1 %v3644_v61  ;;  %v2875_v61 = vld [vmem:[%s4373_s9 + $0x18] sm:$0xff] }
0x14b7   :  { %3474 = vmatprep.subr.mxu1 %v3722_v7 }
0x14b8   :  { %3475 = vmatpush3.msra.mxu1 %v3645_v62  ;;  %v2874_v62 = vld [vmem:[%s4373_s9 + $0x10] sm:$0xff] }
0x14b9   :  { %3476 = vmatprep.subr.mxu1 %v3722_v7 }
0x14ba   :  { %3477 = vmatpush3.msra.mxu1 %v3646_v63  ;;  %v2873_v63 = vld [vmem:[%s4373_s9 + $0x8] sm:$0xff] }
0x14be   :  { %v2529_v47 = vpop.permute.xlu1 %2528 }
0x14bf   :  { %3446 = vmatmul.mubr.msk.f32.vlgmr.msra.gmra.mxu0 %vm715_vm4, %v2529_v47  ;;  %v2872_v47 = vld [vmem:[%s4373_s9] sm:$0xff]  ;;  %s2966_s9 = sshll.u32 %s3733_s6, 4  ;;  %s2967_s9 = int_to_ptr.vmem [resolvable:$true] %s2966_s9 }
0x14c0   :  { %3460 = vmatpush3.msra.mxu0 %v3647_v57  ;;  %3467 = vmatprep.mubr.msk.f32.mxu0 %vm3723_vm2, %v3722_v7  ;;  %p3697_p11 = scmp.lt.s32.totalorder %s2967_s9, %s2967_s9 }
0x14c1   :  { %3461 = vmatprep.subr.mxu0 %v3722_v7 }
0x14c2   :  { %3462 = vmatpush3.msra.mxu0 %v3648_v58 }
0x14c3   :  { %3463 = vmatprep.subr.mxu0 %v3722_v7 }
0x14c4   :  { %3464 = vmatpush3.msra.mxu0 %v3649_v60 }
0x14c5   :  { %3465 = vmatprep.subr.mxu0 %v3722_v7 }
0x14c6   :  { %3466 = vmatpush3.msra.mxu0 %v3650_v29 }
0x14c7   :  { %3481 = vmatprep.subr.mxu0 %v3722_v7 }
0x156b   :  { %v2499_v1 = vpop.f32.mrf.mxu1 }
0x156c   :  { %v2500_v2 = vadd.f32 %v2499_v1, %v712_v0  ;;  %v3034_v0 = vld [vmem:[%s4374_s10] ss:$0 sm:$0xff] }
0x156d   :  { %v3436_v3 = vpop.f32.mrf.mxu1 }
0x156e   :  { %3614 = vtanh.f32 %v2500_v2  ;;  %v3027_v51 = vmul.f32 -1.442695, %v2500_v2 }
0x1573   :  { %v2668_v5 = vpop.f32.mrf.mxu1 }
0x1575   :  { %v3458_v8 = vpop.f32.mrf.mxu1 }
0x157b   :  { %v3615_v10 = vpop.eup %3614 }
0x157c   :  { %2512 = vrot.lane.b32.xlu0 %v3615_v10, %s3728_s26 }
0x157f   :  { %v2598_v4 = vpop.f32.mrf.mxu0 }
0x1580   :  { %v2669_v11 = vadd.f32 %v2668_v5, %v2598_v4 }
0x1581   :  { %v3447_v12 = vpop.f32.mrf.mxu0 }
0x1582   :  { %v2672_v49 = vadd.f32 %v4003_v15, %v2669_v11 }
0x1584   :  { %3616 = vtanh.f32 %v2672_v49  ;;  %v3030_v13 = vmul.f32 -1.442695, %v2672_v49 }
0x1585   :  { %3618 = vpow2.f32 %v3027_v51 }
0x1591   :  { %v3617_v50 = vpop.eup %3616 }
0x1592   :  { %2682 = vrot.lane.b32.xlu1 %v3617_v50, %s3728_s26  ;;  %v3619_v9 = vpop.eup %3618 }
0x1593   :  { %v2506_v52 = vadd.f32 1.0, %v3619_v9 }
0x1595   :  { %3620 = vrcp.f32 %v2506_v52 }
0x1596   :  { %3622 = vpow2.f32 %v3030_v13 }
0x15a2   :  { %v3621_v14 = vpop.eup %3620 }
0x15a3   :  { %v3623_v27 = vpop.eup %3622  ;;  %v2510_v25 = vmul.f32 %v3621_v14, %v4283_v43  ;;  %v3651_v43 = vld [vmem:[%s4372_s8] ss:$0 sm:$0xff] }
0x15a4   :  { %v2676_v18 = vadd.f32 1.0, %v3623_v27 }
0x15a6   :  { %3624 = vrcp.f32 %v2676_v18 }
0x15b3   :  { %v3625_v15 = vpop.eup %3624 }
0x15b4   :  { %v2680_v32 = vmul.f32 %v3625_v15, %v4288_v44 }
0x15ee   :  { %v2513_v16 = vpop.permute.xlu0 %2512 }
0x15ef   :  { %v2515_v17 = vmul.f32 %v3621_v14, %v2513_v16 }
0x15f1   :  { %2517 = vrot.lane.b32.xlu0 %v2515_v17, %s3729_s27 }
0x1604   :  { %v2683_v19 = vpop.permute.xlu1 %2682 }
0x1605   :  { %v2685_v21 = vmul.f32 %v3625_v15, %v2683_v19 }
0x1607   :  { %2687 = vrot.lane.b32.xlu1 %v2685_v21, %s3729_s27 }
0x1663   :  { %v2518_v26 = vpop.permute.xlu0 %2517 }
0x1664   :  { %v2520_v28 = vadd.f32 %v2518_v26, %v2510_v25 }
0x1666   :  { %3626 = vtanh.f32 %v2520_v28 }
0x1673   :  { %v3627_v30 = vpop.eup %3626 }
0x1674   :  { %2523 = vrot.lane.b32.xlu0 %v3627_v30, %s3728_s26 }
0x1679   :  { %v2688_v34 = vpop.permute.xlu1 %2687 }
0x167a   :  { %v2690_v31 = vadd.f32 %v2688_v34, %v2680_v32 }
0x167c   :  { %3628 = vtanh.f32 %v2690_v31 }
0x1689   :  { %v3629_v20 = vpop.eup %3628 }
0x168a   :  { %2693 = vrot.lane.b32.xlu1 %v3629_v20, %s3728_s26 }
0x16e6   :  { %v2524_v35 = vpop.permute.xlu0 %2523 }
0x16e7   :  { %v2526_v36 = vmul.f32 %v3621_v14, %v2524_v35 }
0x16e9   :  { %2773 = vrot.lane.b32.xlu1 %v2526_v36, %s3729_s27 }
0x16fc   :  { %v2694_v37 = vpop.permute.xlu1 %2693 }
0x16fd   :  { %v2696_v38 = vmul.f32 %v3625_v15, %v2694_v37 }
0x16ff   :  { %2698 = vrot.lane.b32.xlu0 %v2696_v38, %s3729_s27 }
0x175b   :  { %v2774_v39 = vpop.permute.xlu1 %2773 }
0x175c   :  { %3479 = vmatmul.mubr.msk.f32.vlgmr.msra.gmra.mxu1 %vm715_vm4, %v2774_v39 }
0x1771   :  { %v2699_v22 = vpop.permute.xlu0 %2698 }
0x1772   :  { %3468 = vmatmul.mubr.msk.f32.vlgmr.msra.gmra.mxu0 %vm715_vm4, %v2699_v22 }
0x1773   :  { %3489 = vmatprep.mubr.msk.f32.mxu0 %vm3723_vm2, %v3722_v7  ;;  %3482 = vmatpush3.msra.mxu0 %v2875_v61 }
0x1774   :  { %3483 = vmatprep.subr.mxu0 %v3722_v7 }
0x1775   :  { %3484 = vmatpush3.msra.mxu0 %v2874_v62 }
0x1776   :  { %3485 = vmatprep.subr.mxu0 %v3722_v7 }
0x1777   :  { %3486 = vmatpush3.msra.mxu0 %v2873_v63 }
0x1778   :  { %3487 = vmatprep.subr.mxu0 %v3722_v7 }
0x1779   :  { %3488 = vmatpush3.msra.mxu0 %v2872_v47 }
0x181c   :  { %v2843_v40 = vpop.f32.mrf.mxu1 }
0x181e   :  { %v3480_v41 = vpop.f32.mrf.mxu1 }
0x1832   :  { %v2768_v23 = vpop.f32.mrf.mxu0 }
0x1833   :  { %v2844_v42 = vadd.f32 %v2843_v40, %v2768_v23 }
0x1834   :  { %v3469_v24 = vpop.f32.mrf.mxu0 }
0x1835   :  { %v2847_v33 = vadd.f32 %v3651_v43, %v2844_v42 }
0x1837   :  { %3630 = vtanh.f32 %v2847_v33  ;;  %v3033_v45 = vmul.f32 -1.442695, %v2847_v33 }
0x1839   :  { %3632 = vpow2.f32 %v3033_v45 }
0x1844   :  { %v3631_v6 = vpop.eup %3630 }
0x1845   :  { %2857 = vrot.lane.b32.xlu0 %v3631_v6, %s3728_s26 }
0x1846   :  { %v3633_v44 = vpop.eup %3632 }
0x1847   :  { %v2851_v46 = vadd.f32 1.0, %v3633_v44 }
0x1849   :  { %3634 = vrcp.f32 %v2851_v46 }
0x1856   :  { %v3635_v53 = vpop.eup %3634 }
0x1857   :  { %v2855_v55 = vmul.f32 %v3635_v53, %v2690_v31 }
0x18b7   :  { %v2858_v48 = vpop.permute.xlu0 %2857 }
0x18b8   :  { %v2860_v54 = vmul.f32 %v3635_v53, %v2858_v48 }
0x18ba   :  { %2862 = vrot.lane.b32.xlu1 %v2860_v54, %s3729_s27 }
0x192c   :  { %v2863_v56 = vpop.permute.xlu1 %2862 }
0x192d   :  { %v2865_v59 = vadd.f32 %v2863_v56, %v2855_v55 }
0x192f   :  { %3636 = vtanh.f32 %v2865_v59 }
0x193c   :  { %v3637_v57 = vpop.eup %3636 }
0x193d   :  { %2868 = vrot.lane.b32.xlu0 %v3637_v57, %s3728_s26  ;;  %s3692_s26 = scalar_lea.vmem %s2967_s9, 32 }
0x193e   :  { %p3693_p10 = scmp.ne.s32.totalorder %s2967_s9, %s3692_s26  ;;  %p3698_p12 = scmp.lt.s32.totalorder %s3692_s26, %s3692_s26 }
0x1940   :  { %p3699_p13 = por %p3698_p12, %p3697_p11 }
0x1942   :  { %p3700_p0 = pnand %p3699_p13, %p3693_p10 }
0x19af   :  { %v2869_v58 = vpop.permute.xlu0 %2868 }
0x19b0   :  { %v2871_v60 = vmul.f32 %v3635_v53, %v2869_v58 }
0x19b2   :  { %2884 = vrot.lane.b32.xlu1 %v2871_v60, %s3729_s27 }
0x1a24   :  { %v2885_v29 = vpop.permute.xlu1 %2884 }
0x1a25   :  { %3490 = vmatmul.mubr.msk.f32.vlgmr.msra.gmra.mxu0 %vm715_vm4, %v2885_v29 }
0x1ae5   :  { %v2954_v1 = vpop.f32.mrf.mxu0 }
0x1ae6   :  { %v2955_v7 = vadd.f32 %v3034_v0, %v2954_v1 }
0x1ae7   :  { %v3491_v2 = vpop.f32.mrf.mxu0 }
0x1ae8   :  { %2959 = vst.msk [vmem:[#allocation7] sm:$0x3] %vm2958_vm5, %v2955_v7 }
0x1ae9   :  { %3703 = shalt.err (!%p3700_p0)
}
0x1aea   :  { %2969 = dma.vmem_to_hbm [thread:$0]  %s2967_s9, 32, %s4375_s11, [#allocation4]  }
0x1aeb   :  { %3716 = dma.done.wait [#allocation4], 32  }
0x1aec   :  { %3717 = vsyncadd [#allocation4], 4294967264 }
0x1aed   :  { %2973 = vsyncpa [#allocation3], 1 }
0x1aee   :  { %2974 = vsyncpa [#allocation6], 1 }
0x1aef   :  { %2975 = vsyncpa [#allocation4], 1 }

</bundles_post_ra>
